<compile_context>
chip_gen: v7x
topology: tpu7x:2x2x1
jax: 0.10.0
libtpu: 0.0.40
codegen_flags: <defaults>
</compile_context>

<pallas_src>
import jax
import jax.numpy as jnp
from jax import lax
from jax.experimental import pallas as pl
from jax.experimental.pallas import tpu as pltpu


def _round_up(x, m):
    return ((x + m - 1) // m) * m


def vae_kernel(n_ref,                       # scalar prefetch: [1] int32, valid rows
               x_ref, eps_ref,              # [tb, 784] f32, [tb, Zp] f32
               w1_ref, w2_ref, wd1_ref, wd2_ref,   # bf16 weights (padded/fused)
               b_ref,                       # [1, 2*Hp + 2*Zp + 784] f32 packed biases
               loss_ref):                   # [1, 1] f32 SMEM partial loss
    tb, D = x_ref.shape
    HP = w1_ref.shape[1]
    ZP2 = w2_ref.shape[1]
    ZP = ZP2 // 2

    x = x_ref[...]          # f32 (kept f32 for the BCE term)
    eps = eps_ref[...]      # f32, zero in padded latent columns / padded rows

    # Packed bias slices (all offsets are multiples of 128 lanes).
    b1 = b_ref[:, 0:HP]
    b2 = b_ref[:, HP:HP + ZP2]
    bd1 = b_ref[:, HP + ZP2:2 * HP + ZP2]
    bd2 = b_ref[:, 2 * HP + ZP2:2 * HP + ZP2 + D]

    # ---- Encoder (bf16 MXU matmuls, f32 accumulation & elementwise) ----
    h = jnp.dot(x.astype(jnp.bfloat16), w1_ref[...],
                preferred_element_type=jnp.float32) + b1
    h = jnp.maximum(h, 0.0)                                     # [tb, Hp]

    enc = jnp.dot(h.astype(jnp.bfloat16), w2_ref[...],
                  preferred_element_type=jnp.float32) + b2       # [tb, 2*Zp]
    mean = enc[:, 0:ZP]                                          # [tb, Zp]
    logvar = enc[:, ZP:ZP2]                                      # [tb, Zp]

    # ---- Reparameterize ----
    z = mean + jnp.exp(0.5 * logvar) * eps                       # [tb, Zp]

    # ---- Decoder ----
    hd = jnp.dot(z.astype(jnp.bfloat16), wd1_ref[...],
                 preferred_element_type=jnp.float32) + bd1
    hd = jnp.maximum(hd, 0.0)                                    # [tb, Hp]
    logits = jnp.dot(hd.astype(jnp.bfloat16), wd2_ref[...],
                     preferred_element_type=jnp.float32) + bd2   # [tb, 784]

    # ---- Row-validity mask (padded batch rows contribute 0) ----
    n_valid = n_ref[0]
    row = (pl.program_id(0) * tb
           + lax.broadcasted_iota(jnp.int32, (tb, 1), 0))
    mask = (row < n_valid).astype(jnp.float32)                   # [tb, 1]

    # ---- ELBO loss ----
    # BCE from logits: log sigmoid(l) = -softplus(-l), log(1-sigmoid(l)) = -softplus(l)
    # (clamped at -100 to match torch's binary_cross_entropy clamp).
    sp_pos = jnp.maximum(logits, 0.0) + jnp.log(1.0 + jnp.exp(-jnp.abs(logits)))
    sp_neg = sp_pos - logits
    log_r = jnp.maximum(-sp_neg, -100.0)
    log_1mr = jnp.maximum(-sp_pos, -100.0)
    bce = -jnp.sum(mask * (x * log_r + (1.0 - x) * log_1mr))

    # Padded latent columns have mean = logvar = 0 -> 1 + 0 - 0 - 1 = 0 contribution.
    kld = -0.5 * jnp.sum(mask * (1.0 + logvar - mean * mean - jnp.exp(logvar)))

    loss_ref[0, 0] = bce + kld


def vae_forward(x_img, eps, packed, *, tb=128):
    """x_img: [B, 1, 28, 28] f32; eps: [B, z_dim] f32; packed: pack_params() output."""
    B = x_img.shape[0]
    D = 784
    ZP = packed["wd1"].shape[0]
    x = x_img.reshape(B, D).astype(jnp.float32)

    # Batch tile: multiple of 8 sublanes, no larger than the (rounded-up) batch.
    tb = int(min(tb, _round_up(B, 8)))
    Bp = _round_up(B, tb)
    nt = Bp // tb

    if Bp != B:
        x = jnp.pad(x, ((0, Bp - B), (0, 0)))
    eps_p = jnp.zeros((Bp, ZP), jnp.float32).at[:B, :eps.shape[1]].set(eps)

    n_valid = jnp.array([B], jnp.int32)

    grid_spec = pltpu.PrefetchScalarGridSpec(
        num_scalar_prefetch=1,
        grid=(nt,),
        in_specs=[
            pl.BlockSpec((tb, D), lambda i, n: (i, 0)),          # x tile
            pl.BlockSpec((tb, ZP), lambda i, n: (i, 0)),         # eps tile
            pl.BlockSpec(packed["w1"].shape, lambda i, n: (0, 0)),   # weights stay
            pl.BlockSpec(packed["w2"].shape, lambda i, n: (0, 0)),   # VMEM-resident
            pl.BlockSpec(packed["wd1"].shape, lambda i, n: (0, 0)),  # across the
            pl.BlockSpec(packed["wd2"].shape, lambda i, n: (0, 0)),  # batch grid
            pl.BlockSpec(packed["biases"].shape, lambda i, n: (0, 0)),
        ],
        out_specs=pl.BlockSpec((1, 1), lambda i, n: (i, 0),
                               memory_space=pltpu.MemorySpace.SMEM),
    )

    partial = pl.pallas_call(
        vae_kernel,
        out_shape=jax.ShapeDtypeStruct((nt, 1), jnp.float32),
        grid_spec=grid_spec,
        compiler_params=pltpu.CompilerParams(
            dimension_semantics=("parallel",)),
    )(n_valid, x, eps_p,
      packed["w1"], packed["w2"], packed["wd1"], packed["wd2"], packed["biases"])

    return jnp.sum(partial) / jnp.float32(B)


def init_params(key, hidden_dim=500, z_dim=20):
    """Raw (PyTorch-like) parameters: weights [in, out], biases [out], f32."""
    def linear(k, fan_in, fan_out):
        kw, kb = jax.random.split(k)
        bound = 1.0 / jnp.sqrt(jnp.float32(fan_in))
        w = jax.random.uniform(kw, (fan_in, fan_out), jnp.float32, -bound, bound)
        b = jax.random.uniform(kb, (fan_out,), jnp.float32, -bound, bound)
        return w, b

    ks = jax.random.split(key, 5)
    w1, b1 = linear(ks[0], 784, hidden_dim)
    w21, b21 = linear(ks[1], hidden_dim, z_dim)
    w22, b22 = linear(ks[2], hidden_dim, z_dim)
    wd1, bd1 = linear(ks[3], z_dim, hidden_dim)
    wd2, bd2 = linear(ks[4], hidden_dim, 784)
    return dict(w1=w1, b1=b1, w21=w21, b21=b21, w22=w22, b22=b22,
                wd1=wd1, bd1=bd1, wd2=wd2, bd2=bd2)


def pack_params(p, hidden_dim=500, z_dim=20):
    """Zero-pad to lane-dense shapes, fuse the two encoder heads, cast weights to
    bf16, and pack all biases into one f32 row."""
    D = 784
    HP = _round_up(hidden_dim, 128)   # 500 -> 512
    ZP = _round_up(z_dim, 128)        # 20  -> 128

    w1 = jnp.zeros((D, HP), jnp.float32).at[:, :hidden_dim].set(p["w1"])
    w2 = (jnp.zeros((HP, 2 * ZP), jnp.float32)
          .at[:hidden_dim, :z_dim].set(p["w21"])
          .at[:hidden_dim, ZP:ZP + z_dim].set(p["w22"]))
    wd1 = jnp.zeros((ZP, HP), jnp.float32).at[:z_dim, :hidden_dim].set(p["wd1"])
    wd2 = jnp.zeros((HP, D), jnp.float32).at[:hidden_dim, :].set(p["wd2"])

    biases = jnp.zeros((1, 2 * HP + 2 * ZP + D), jnp.float32)
    biases = biases.at[0, 0:hidden_dim].set(p["b1"])
    biases = biases.at[0, HP:HP + z_dim].set(p["b21"])
    biases = biases.at[0, HP + ZP:HP + ZP + z_dim].set(p["b22"])
    biases = biases.at[0, HP + 2 * ZP:HP + 2 * ZP + hidden_dim].set(p["bd1"])
    biases = biases.at[0, 2 * HP + 2 * ZP:2 * HP + 2 * ZP + D].set(p["bd2"])

    return dict(w1=w1.astype(jnp.bfloat16),
                w2=w2.astype(jnp.bfloat16),
                wd1=wd1.astype(jnp.bfloat16),
                wd2=wd2.astype(jnp.bfloat16),
                biases=biases)


if __name__ == "__main__":
    key = jax.random.PRNGKey(0)
    k_params, k_x, k_eps = jax.random.split(key, 3)

    hidden_dim, z_dim, batch = 500, 20, 8
    raw = init_params(k_params, hidden_dim, z_dim)
    packed = pack_params(raw, hidden_dim, z_dim)

    # Synthetic "binarized MNIST"-like input in [0, 1], NCHW.
    x_img = jax.random.uniform(k_x, (batch, 1, 28, 28), jnp.float32)
    # TODO(synk): reparameterization noise (torch.randn_like) generated outside
    # the kernel with jax.random for determinism; could use pltpu.prng_* in-kernel.
    eps = jax.random.normal(k_eps, (batch, z_dim), jnp.float32)

    loss = jax.jit(vae_forward)(x_img, eps, packed)
    jax.block_until_ready(loss)

    # Pure-JAX f32 reference (matches the PyTorch module semantics).
    def ref(x_img, eps, p):
        x = x_img.reshape(x_img.shape[0], 784)
        h = jnp.maximum(x @ p["w1"] + p["b1"], 0.0)
        mean = h @ p["w21"] + p["b21"]
        logvar = h @ p["w22"] + p["b22"]
        z = mean + jnp.exp(0.5 * logvar) * eps
        hd = jnp.maximum(z @ p["wd1"] + p["bd1"], 0.0)
        recon = jax.nn.sigmoid(hd @ p["wd2"] + p["bd2"])
        bce = -jnp.sum(x * jnp.maximum(jnp.log(recon), -100.0)
                       + (1 - x) * jnp.maximum(jnp.log(1 - recon), -100.0))
        kld = -0.5 * jnp.sum(1 + logvar - mean ** 2 - jnp.exp(logvar))
        return (bce + kld) / x.shape[0]

    ref_loss = ref(x_img, eps, raw)
    # bf16 matmul operands -> loose-ish tolerance vs. the f32 reference.
    assert jnp.allclose(loss, ref_loss, rtol=2e-2, atol=2.0), (loss, ref_loss)

    print("KERNEL_OK")
</pallas_src>

<mosaic_0001>
module attributes {stable_mosaic.version = 11 : i64} {
  func.func @vae_kernel(%arg0: i32, %arg1: memref<1xi32, #tpu.memory_space<smem>>, %arg2: memref<8x784xf32, #tpu.memory_space<vmem>>, %arg3: memref<8x128xf32, #tpu.memory_space<vmem>>, %arg4: memref<784x512xbf16, #tpu.memory_space<vmem>>, %arg5: memref<512x256xbf16, #tpu.memory_space<vmem>>, %arg6: memref<128x512xbf16, #tpu.memory_space<vmem>>, %arg7: memref<512x784xbf16, #tpu.memory_space<vmem>>, %arg8: memref<1x2064xf32, #tpu.memory_space<vmem>>, %arg9: memref<1x1xf32, #tpu.memory_space<smem>>) attributes {dimension_semantics = [#tpu.dimension_semantics<parallel>], iteration_bounds = array<i64: 1>, scalar_prefetch = 1 : i64, scratch_operands = 0 : i64, tpu.core_type = #tpu.core_type<tc>, window_params = [{transform_indices = @transform_0, window_bounds = array<i64: 8, 784>}, {transform_indices = @transform_1, window_bounds = array<i64: 8, 128>}, {pipeline_mode = #tpu.pipeline_mode<synchronous>, transform_indices = @transform_2, window_bounds = array<i64: 784, 512>}, {pipeline_mode = #tpu.pipeline_mode<synchronous>, transform_indices = @transform_3, window_bounds = array<i64: 512, 256>}, {pipeline_mode = #tpu.pipeline_mode<synchronous>, transform_indices = @transform_4, window_bounds = array<i64: 128, 512>}, {pipeline_mode = #tpu.pipeline_mode<synchronous>, transform_indices = @transform_5, window_bounds = array<i64: 512, 784>}, {pipeline_mode = #tpu.pipeline_mode<synchronous>, transform_indices = @transform_6, window_bounds = array<i64: 1, 2064>}, {transform_indices = @transform_7, window_bounds = array<i64: 1, 1>}]} {
    %c0 = arith.constant 0 : index
    %c0_0 = arith.constant 0 : index
    %0 = vector.load %arg2[%c0, %c0_0] : memref<8x784xf32, #tpu.memory_space<vmem>>, vector<8x784xf32>
    %c0_1 = arith.constant 0 : index
    %c0_2 = arith.constant 0 : index
    %1 = vector.load %arg3[%c0_1, %c0_2] : memref<8x128xf32, #tpu.memory_space<vmem>>, vector<8x128xf32>
    %c0_3 = arith.constant 0 : index
    %c0_4 = arith.constant 0 : index
    %2 = vector.load %arg8[%c0_3, %c0_4] : memref<1x2064xf32, #tpu.memory_space<vmem>>, vector<1x512xf32>
    %c0_5 = arith.constant 0 : index
    %c512 = arith.constant 512 : index
    %3 = vector.load %arg8[%c0_5, %c512] : memref<1x2064xf32, #tpu.memory_space<vmem>>, vector<1x256xf32>
    %c0_6 = arith.constant 0 : index
    %c768 = arith.constant 768 : index
    %4 = vector.load %arg8[%c0_6, %c768] : memref<1x2064xf32, #tpu.memory_space<vmem>>, vector<1x512xf32>
    %c0_7 = arith.constant 0 : index
    %c1280 = arith.constant 1280 : index
    %5 = vector.load %arg8[%c0_7, %c1280] : memref<1x2064xf32, #tpu.memory_space<vmem>>, vector<1x784xf32>
    %6 = arith.truncf %0 : vector<8x784xf32> to vector<8x784xbf16>
    %c0_8 = arith.constant 0 : index
    %c0_9 = arith.constant 0 : index
    %7 = vector.load %arg4[%c0_8, %c0_9] : memref<784x512xbf16, #tpu.memory_space<vmem>>, vector<784x512xbf16>
    %cst = arith.constant dense<0.000000e+00> : vector<8x512xf32>
    %8 = tpu.matmul %6, %7, %cst {dimension_numbers = #tpu.dot_dimension_numbers<[1], [0], [0], [1], [0, 0, 1, 1], [], []>} : vector<8x784xbf16>, vector<784x512xbf16>, vector<8x512xf32> -> vector<8x512xf32>
    %9 = vector.broadcast %2 : vector<1x512xf32> to vector<8x512xf32>
    %10 = arith.addf %8, %9 : vector<8x512xf32>
    %cst_10 = arith.constant 0.000000e+00 : f32
    %11 = vector.broadcast %cst_10 : f32 to vector<8x512xf32>
    %12 = arith.maximumf %10, %11 : vector<8x512xf32>
    %13 = arith.truncf %12 : vector<8x512xf32> to vector<8x512xbf16>
    %c0_11 = arith.constant 0 : index
    %c0_12 = arith.constant 0 : index
    %14 = vector.load %arg5[%c0_11, %c0_12] : memref<512x256xbf16, #tpu.memory_space<vmem>>, vector<512x256xbf16>
    %cst_13 = arith.constant dense<0.000000e+00> : vector<8x256xf32>
    %15 = tpu.matmul %13, %14, %cst_13 {dimension_numbers = #tpu.dot_dimension_numbers<[1], [0], [0], [1], [0, 0, 1, 1], [], []>} : vector<8x512xbf16>, vector<512x256xbf16>, vector<8x256xf32> -> vector<8x256xf32>
    %16 = vector.broadcast %3 : vector<1x256xf32> to vector<8x256xf32>
    %17 = arith.addf %15, %16 : vector<8x256xf32>
    %18 = vector.extract_strided_slice %17 {offsets = [0, 0], sizes = [8, 128], strides = [1, 1]} : vector<8x256xf32> to vector<8x128xf32>
    %19 = vector.extract_strided_slice %17 {offsets = [0, 128], sizes = [8, 128], strides = [1, 1]} : vector<8x256xf32> to vector<8x128xf32>
    %cst_14 = arith.constant 5.000000e-01 : f32
    %20 = vector.broadcast %cst_14 : f32 to vector<8x128xf32>
    %21 = arith.mulf %20, %19 : vector<8x128xf32>
    %22 = math.exp %21 : vector<8x128xf32>
    %23 = arith.mulf %22, %1 : vector<8x128xf32>
    %24 = arith.addf %18, %23 : vector<8x128xf32>
    %25 = arith.truncf %24 : vector<8x128xf32> to vector<8x128xbf16>
    %c0_15 = arith.constant 0 : index
    %c0_16 = arith.constant 0 : index
    %26 = vector.load %arg6[%c0_15, %c0_16] : memref<128x512xbf16, #tpu.memory_space<vmem>>, vector<128x512xbf16>
    %cst_17 = arith.constant dense<0.000000e+00> : vector<8x512xf32>
    %27 = tpu.matmul %25, %26, %cst_17 {dimension_numbers = #tpu.dot_dimension_numbers<[1], [0], [0], [1], [0, 0, 1, 1], [], []>} : vector<8x128xbf16>, vector<128x512xbf16>, vector<8x512xf32> -> vector<8x512xf32>
    %28 = vector.broadcast %4 : vector<1x512xf32> to vector<8x512xf32>
    %29 = arith.addf %27, %28 : vector<8x512xf32>
    %cst_18 = arith.constant 0.000000e+00 : f32
    %30 = vector.broadcast %cst_18 : f32 to vector<8x512xf32>
    %31 = arith.maximumf %29, %30 : vector<8x512xf32>
    %32 = arith.truncf %31 : vector<8x512xf32> to vector<8x512xbf16>
    %c0_19 = arith.constant 0 : index
    %c0_20 = arith.constant 0 : index
    %33 = vector.load %arg7[%c0_19, %c0_20] : memref<512x784xbf16, #tpu.memory_space<vmem>>, vector<512x784xbf16>
    %cst_21 = arith.constant dense<0.000000e+00> : vector<8x784xf32>
    %34 = tpu.matmul %32, %33, %cst_21 {dimension_numbers = #tpu.dot_dimension_numbers<[1], [0], [0], [1], [0, 0, 1, 1], [], []>} : vector<8x512xbf16>, vector<512x784xbf16>, vector<8x784xf32> -> vector<8x784xf32>
    %35 = vector.broadcast %5 : vector<1x784xf32> to vector<8x784xf32>
    %36 = arith.addf %34, %35 : vector<8x784xf32>
    %c0_22 = arith.constant 0 : index
    %37 = memref.load %arg1[%c0_22] : memref<1xi32, #tpu.memory_space<smem>>
    %c8_i32 = arith.constant 8 : i32
    %38 = arith.muli %arg0, %c8_i32 : i32
    %39 = tpu.iota {dimensions = array<i32: 0>} : vector<8x1xi32>
    %40 = vector.broadcast %38 : i32 to vector<8x1xi32>
    %41 = arith.addi %40, %39 : vector<8x1xi32>
    %42 = vector.broadcast %37 : i32 to vector<8x1xi32>
    %43 = arith.cmpi slt, %41, %42 : vector<8x1xi32>
    %44 = arith.extui %43 : vector<8x1xi1> to vector<8x1xi32>
    %45 = arith.sitofp %44 : vector<8x1xi32> to vector<8x1xf32>
    %cst_23 = arith.constant 0.000000e+00 : f32
    %46 = vector.broadcast %cst_23 : f32 to vector<8x784xf32>
    %47 = arith.maximumf %36, %46 : vector<8x784xf32>
    %48 = math.absf %36 : vector<8x784xf32>
    %cst_24 = arith.constant 0.000000e+00 : f32
    %49 = vector.broadcast %cst_24 : f32 to vector<8x784xf32>
    %50 = arith.subf %49, %48 : vector<8x784xf32>
    %51 = math.exp %50 : vector<8x784xf32>
    %cst_25 = arith.constant 1.000000e+00 : f32
    %52 = vector.broadcast %cst_25 : f32 to vector<8x784xf32>
    %53 = arith.addf %52, %51 : vector<8x784xf32>
    %54 = math.log %53 : vector<8x784xf32>
    %55 = arith.addf %47, %54 : vector<8x784xf32>
    %56 = arith.subf %55, %36 : vector<8x784xf32>
    %cst_26 = arith.constant 0.000000e+00 : f32
    %57 = vector.broadcast %cst_26 : f32 to vector<8x784xf32>
    %58 = arith.subf %57, %56 : vector<8x784xf32>
    %cst_27 = arith.constant -1.000000e+02 : f32
    %59 = vector.broadcast %cst_27 : f32 to vector<8x784xf32>
    %60 = arith.maximumf %58, %59 : vector<8x784xf32>
    %cst_28 = arith.constant 0.000000e+00 : f32
    %61 = vector.broadcast %cst_28 : f32 to vector<8x784xf32>
    %62 = arith.subf %61, %55 : vector<8x784xf32>
    %cst_29 = arith.constant -1.000000e+02 : f32
    %63 = vector.broadcast %cst_29 : f32 to vector<8x784xf32>
    %64 = arith.maximumf %62, %63 : vector<8x784xf32>
    %65 = arith.mulf %0, %60 : vector<8x784xf32>
    %cst_30 = arith.constant 1.000000e+00 : f32
    %66 = vector.broadcast %cst_30 : f32 to vector<8x784xf32>
    %67 = arith.subf %66, %0 : vector<8x784xf32>
    %68 = arith.mulf %67, %64 : vector<8x784xf32>
    %69 = arith.addf %65, %68 : vector<8x784xf32>
    %70 = vector.broadcast %45 : vector<8x1xf32> to vector<8x784xf32>
    %71 = arith.mulf %70, %69 : vector<8x784xf32>
    %72 = vector.shape_cast %71 : vector<8x784xf32> to vector<1x8x784xf32>
    %cst_31 = arith.constant dense<0.000000e+00> : vector<1xf32>
    %73 = vector.multi_reduction <add>, %72, %cst_31 [1, 2] : vector<1x8x784xf32> to vector<1xf32>
    %74 = vector.shape_cast %73 : vector<1xf32> to vector<1x1x1xf32>
    %75 = vector.extract %74[0, 0, 0] : f32 from vector<1x1x1xf32>
    %cst_32 = arith.constant 0.000000e+00 : f32
    %76 = arith.subf %cst_32, %75 : f32
    %cst_33 = arith.constant 1.000000e+00 : f32
    %77 = vector.broadcast %cst_33 : f32 to vector<8x128xf32>
    %78 = arith.addf %77, %19 : vector<8x128xf32>
    %79 = arith.mulf %18, %18 : vector<8x128xf32>
    %80 = arith.subf %78, %79 : vector<8x128xf32>
    %81 = math.exp %19 : vector<8x128xf32>
    %82 = arith.subf %80, %81 : vector<8x128xf32>
    %83 = vector.broadcast %45 : vector<8x1xf32> to vector<8x128xf32>
    %84 = arith.mulf %83, %82 : vector<8x128xf32>
    %85 = vector.shape_cast %84 : vector<8x128xf32> to vector<1x8x128xf32>
    %cst_34 = arith.constant dense<0.000000e+00> : vector<1xf32>
    %86 = vector.multi_reduction <add>, %85, %cst_34 [1, 2] : vector<1x8x128xf32> to vector<1xf32>
    %87 = vector.shape_cast %86 : vector<1xf32> to vector<1x1x1xf32>
    %88 = vector.extract %87[0, 0, 0] : f32 from vector<1x1x1xf32>
    %cst_35 = arith.constant -5.000000e-01 : f32
    %89 = arith.mulf %cst_35, %88 : f32
    %90 = arith.addf %76, %89 : f32
    %c0_36 = arith.constant 0 : index
    %c0_37 = arith.constant 0 : index
    %91 = memref.load %arg9[%c0_36, %c0_37] : memref<1x1xf32, #tpu.memory_space<smem>>
    memref.store %90, %arg9[%c0_36, %c0_37] : memref<1x1xf32, #tpu.memory_space<smem>>
    return
  }
  func.func @transform_0(%arg0: i32, %arg1: memref<1xi32, #tpu.memory_space<smem>>) -> (i32, i32) {
    %c0_i32 = arith.constant 0 : i32
    %c0_i32_0 = arith.constant 0 : i32
    return %arg0, %c0_i32 : i32, i32
  }
  func.func @transform_1(%arg0: i32, %arg1: memref<1xi32, #tpu.memory_space<smem>>) -> (i32, i32) {
    %c0_i32 = arith.constant 0 : i32
    %c0_i32_0 = arith.constant 0 : i32
    return %arg0, %c0_i32 : i32, i32
  }
  func.func @transform_2(%arg0: i32, %arg1: memref<1xi32, #tpu.memory_space<smem>>) -> (i32, i32) {
    %c0_i32 = arith.constant 0 : i32
    %c0_i32_0 = arith.constant 0 : i32
    %c0_i32_1 = arith.constant 0 : i32
    return %c0_i32, %c0_i32_0 : i32, i32
  }
  func.func @transform_3(%arg0: i32, %arg1: memref<1xi32, #tpu.memory_space<smem>>) -> (i32, i32) {
    %c0_i32 = arith.constant 0 : i32
    %c0_i32_0 = arith.constant 0 : i32
    %c0_i32_1 = arith.constant 0 : i32
    return %c0_i32, %c0_i32_0 : i32, i32
  }
  func.func @transform_4(%arg0: i32, %arg1: memref<1xi32, #tpu.memory_space<smem>>) -> (i32, i32) {
    %c0_i32 = arith.constant 0 : i32
    %c0_i32_0 = arith.constant 0 : i32
    %c0_i32_1 = arith.constant 0 : i32
    return %c0_i32, %c0_i32_0 : i32, i32
  }
  func.func @transform_5(%arg0: i32, %arg1: memref<1xi32, #tpu.memory_space<smem>>) -> (i32, i32) {
    %c0_i32 = arith.constant 0 : i32
    %c0_i32_0 = arith.constant 0 : i32
    %c0_i32_1 = arith.constant 0 : i32
    return %c0_i32, %c0_i32_0 : i32, i32
  }
  func.func @transform_6(%arg0: i32, %arg1: memref<1xi32, #tpu.memory_space<smem>>) -> (i32, i32) {
    %c0_i32 = arith.constant 0 : i32
    %c0_i32_0 = arith.constant 0 : i32
    %c0_i32_1 = arith.constant 0 : i32
    return %c0_i32, %c0_i32_0 : i32, i32
  }
  func.func @transform_7(%arg0: i32, %arg1: memref<1xi32, #tpu.memory_space<smem>>) -> (i32, i32) {
    %c0_i32 = arith.constant 0 : i32
    %c0_i32_0 = arith.constant 0 : i32
    return %arg0, %c0_i32 : i32, i32
  }
}

</mosaic_0001>

<bundles_post_ra>
// kernel: vae_forward.1
= control target key start
LH: loop header
LB: loop body
LE: loop exit
PB: predicated region body
PF: predicated region fallthrough
CT: control target
= control target key end

     0   :  { %vm1246_vm0 = vcmask 130048   ;;  %s7560_s0 = inlined_call_operand.<no memory space> [shape: s32[1], index: 0, kind: input, shape index: {}]   ;;  %s7561_s1 = inlined_call_operand.vmem [shape: f32[8,784], index: 1, kind: input, shape index: {}]   ;;  %s7562_s2 = inlined_call_operand.vmem [shape: f32[8,128], index: 2, kind: input, shape index: {}]   ;;  %s7563_s3 = inlined_call_operand.vmem [shape: bf16[784,512], index: 3, kind: input, shape index: {}]   ;;  %s7564_s4 = inlined_call_operand.vmem [shape: bf16[512,256], index: 4, kind: input, shape index: {}]   ;;  %s7565_s5 = inlined_call_operand.vmem [shape: bf16[128,512], index: 5, kind: input, shape index: {}]   ;;  %s7566_s6 = inlined_call_operand.vmem [shape: bf16[512,784], index: 6, kind: input, shape index: {}]   ;;  %s7567_s7 = inlined_call_operand.vmem [shape: f32[1,2064], index: 7, kind: input, shape index: {}]   ;;  %s7568_s8 = inlined_call_operand.hbm [shape: f32[1,1], index: 8, kind: output, shape index: {}]  }
   0x1   :  { %v4957_v0 = vld [vmem:[%s7563_s3 + $0x4] ss:$16 sps:$4 sm:$0xff]   ;;  %v4959_v1 = vld [vmem:[%s7563_s3 + $0xc] ss:$16 sps:$4 sm:$0xff]   ;;  %v4961_v2 = vld [vmem:[%s7563_s3] ss:$16 sps:$4 sm:$0xff]  }
   0x2   :  { %1250 = vmatprep.subr.bf16.mxu0 %v4957_v0  ;;  %v4962_v3 = vld [vmem:[%s7563_s3 + $0x8] ss:$16 sps:$4 sm:$0xff]   ;;  %1414 = vmatprep.subr.bf16.mxu1 %v4959_v1  ;;  %v4963_v4 = vld [vmem:[%s7563_s3 + $0x24] ss:$16 sps:$4 sm:$0xff]   ;;  %v4965_v5 = vld [vmem:[%s7563_s3 + $0x2c] ss:$16 sps:$4 sm:$0xff]  }
   0x3   :  { %1251 = vmatpush1.bf16.msra.mxu0 %v4961_v2  ;;  %1415 = vmatpush1.bf16.msra.mxu1 %v4962_v3  ;;  %v4967_v6 = vld [vmem:[%s7563_s3 + $0x20] ss:$16 sps:$4 sm:$0xff]   ;;  %v4968_v7 = vld [vmem:[%s7563_s3 + $0x28] ss:$16 sps:$4 sm:$0xff]   ;;  %v4969_v8 = vld [vmem:[%s7563_s3 + $0x44] ss:$16 sps:$4 sm:$0xff]  }
   0x4   :  { %1252 = vmatprep.subr.bf16.mxu0 %v4963_v4  ;;  %1416 = vmatprep.subr.bf16.mxu1 %v4965_v5  ;;  %v4971_v9 = vld [vmem:[%s7563_s3 + $0x4c] ss:$16 sps:$4 sm:$0xff]   ;;  %v4973_v10 = vld [vmem:[%s7563_s3 + $0x40] ss:$16 sps:$4 sm:$0xff]   ;;  %v4974_v11 = vld [vmem:[%s7563_s3 + $0x48] ss:$16 sps:$4 sm:$0xff]  }
   0x5   :  { %v4975_v12 = vld [vmem:[%s7563_s3 + $0x64] ss:$16 sps:$4 sm:$0xff]   ;;  %v4977_v13 = vld [vmem:[%s7563_s3 + $0x6c] ss:$16 sps:$4 sm:$0xff]   ;;  %v4979_v14 = vld [vmem:[%s7563_s3 + $0x60] ss:$16 sps:$4 sm:$0xff]  }
   0x6   :  { %v4980_v15 = vld [vmem:[%s7563_s3 + $0x68] ss:$16 sps:$4 sm:$0xff]   ;;  %v4981_v16 = vld [vmem:[%s7563_s3 + $0x84] ss:$16 sps:$4 sm:$0xff]   ;;  %v4983_v17 = vld [vmem:[%s7563_s3 + $0x8c] ss:$16 sps:$4 sm:$0xff]  }
   0x7   :  { %1253 = vmatpush1.bf16.msra.mxu0 %v4967_v6  ;;  %1417 = vmatpush1.bf16.msra.mxu1 %v4968_v7  ;;  %v4985_v18 = vld [vmem:[%s7563_s3 + $0x80] ss:$16 sps:$4 sm:$0xff]   ;;  %v4986_v19 = vld [vmem:[%s7563_s3 + $0x88] ss:$16 sps:$4 sm:$0xff]   ;;  %v4987_v20 = vld [vmem:[%s7563_s3 + $0xa4] ss:$16 sps:$4 sm:$0xff]  }
   0x8   :  { %1254 = vmatprep.subr.bf16.mxu0 %v4969_v8  ;;  %1418 = vmatprep.subr.bf16.mxu1 %v4971_v9  ;;  %v4989_v21 = vld [vmem:[%s7563_s3 + $0xac] ss:$16 sps:$4 sm:$0xff]   ;;  %v4991_v22 = vld [vmem:[%s7563_s3 + $0xa0] ss:$16 sps:$4 sm:$0xff]   ;;  %v4992_v23 = vld [vmem:[%s7563_s3 + $0xa8] ss:$16 sps:$4 sm:$0xff]  }
   0x9   :  { %v4993_v24 = vld [vmem:[%s7563_s3 + $0xc4] ss:$16 sps:$4 sm:$0xff]   ;;  %v4995_v25 = vld [vmem:[%s7563_s3 + $0xcc] ss:$16 sps:$4 sm:$0xff]   ;;  %v4997_v26 = vld [vmem:[%s7563_s3 + $0xc0] ss:$16 sps:$4 sm:$0xff]  }
   0xa   :  { %v4998_v27 = vld [vmem:[%s7563_s3 + $0xc8] ss:$16 sps:$4 sm:$0xff]   ;;  %v4999_v28 = vld [vmem:[%s7563_s3 + $0xe4] ss:$16 sps:$4 sm:$0xff]   ;;  %v5001_v29 = vld [vmem:[%s7563_s3 + $0xec] ss:$16 sps:$4 sm:$0xff]  }
   0xb   :  { %1255 = vmatpush1.bf16.msra.mxu0 %v4973_v10  ;;  %1419 = vmatpush1.bf16.msra.mxu1 %v4974_v11  ;;  %v5003_v30 = vld [vmem:[%s7563_s3 + $0xe0] ss:$16 sps:$4 sm:$0xff]   ;;  %v5004_v31 = vld [vmem:[%s7563_s3 + $0xe8] ss:$16 sps:$4 sm:$0xff]   ;;  %v5005_v32 = vld [vmem:[%s7563_s3 + $0x104] ss:$16 sps:$4 sm:$0xff]  }
   0xc   :  { %1256 = vmatprep.subr.bf16.mxu0 %v4975_v12  ;;  %1420 = vmatprep.subr.bf16.mxu1 %v4977_v13  ;;  %v5007_v33 = vld [vmem:[%s7563_s3 + $0x10c] ss:$16 sps:$4 sm:$0xff]   ;;  %v5009_v34 = vld [vmem:[%s7563_s3 + $0x100] ss:$16 sps:$4 sm:$0xff]   ;;  %v5010_v35 = vld [vmem:[%s7563_s3 + $0x108] ss:$16 sps:$4 sm:$0xff]  }
   0xd   :  { %v5011_v36 = vld [vmem:[%s7563_s3 + $0x124] ss:$16 sps:$4 sm:$0xff]   ;;  %v5013_v37 = vld [vmem:[%s7563_s3 + $0x12c] ss:$16 sps:$4 sm:$0xff]   ;;  %v5015_v38 = vld [vmem:[%s7563_s3 + $0x120] ss:$16 sps:$4 sm:$0xff]  }
   0xe   :  { %v5016_v39 = vld [vmem:[%s7563_s3 + $0x128] ss:$16 sps:$4 sm:$0xff]   ;;  %v5017_v40 = vld [vmem:[%s7563_s3 + $0x144] ss:$16 sps:$4 sm:$0xff]   ;;  %v5019_v41 = vld [vmem:[%s7563_s3 + $0x14c] ss:$16 sps:$4 sm:$0xff]  }
   0xf   :  { %1257 = vmatpush1.bf16.msra.mxu0 %v4979_v14  ;;  %1421 = vmatpush1.bf16.msra.mxu1 %v4980_v15  ;;  %v5021_v42 = vld [vmem:[%s7563_s3 + $0x140] ss:$16 sps:$4 sm:$0xff]   ;;  %v5022_v43 = vld [vmem:[%s7563_s3 + $0x148] ss:$16 sps:$4 sm:$0xff]   ;;  %v5023_v44 = vld [vmem:[%s7563_s3 + $0x164] ss:$16 sps:$4 sm:$0xff]  }
  0x10   :  { %1258 = vmatprep.subr.bf16.mxu0 %v4981_v16  ;;  %1422 = vmatprep.subr.bf16.mxu1 %v4983_v17  ;;  %v5025_v45 = vld [vmem:[%s7563_s3 + $0x16c] ss:$16 sps:$4 sm:$0xff]   ;;  %v5027_v47 = vld [vmem:[%s7563_s3 + $0x160] ss:$16 sps:$4 sm:$0xff]   ;;  %v5028_v49 = vld [vmem:[%s7563_s3 + $0x168] ss:$16 sps:$4 sm:$0xff]  }
  0x11   :  { %v31_v46 = vld [vmem:[%s7561_s1 + $0x8] sm:$0xff]  ;;  %v5029_v50 = vld [vmem:[%s7563_s3 + $0x184] ss:$16 sps:$4 sm:$0xff]   ;;  %v5033_v52 = vld [vmem:[%s7563_s3 + $0x180] ss:$16 sps:$4 sm:$0xff]  }
  0x12   :  { %v43_v48 = vpack.c.bf16 %v31_v46, %v31_v46  ;;  %v5031_v51 = vld [vmem:[%s7563_s3 + $0x18c] ss:$16 sps:$4 sm:$0xff]   ;;  %v5034_v53 = vld [vmem:[%s7563_s3 + $0x188] ss:$16 sps:$4 sm:$0xff]   ;;  %v5035_v54 = vld [vmem:[%s7563_s3 + $0x1a4] ss:$16 sps:$4 sm:$0xff]  }
  0x13   :  { %1259 = vmatpush1.bf16.msra.mxu0 %v4985_v18  ;;  %1423 = vmatpush1.bf16.msra.mxu1 %v4986_v19  ;;  %v5037_v55 = vld [vmem:[%s7563_s3 + $0x1ac] ss:$16 sps:$4 sm:$0xff]   ;;  %v5039_v56 = vld [vmem:[%s7563_s3 + $0x1a0] ss:$16 sps:$4 sm:$0xff]   ;;  %v5040_v57 = vld [vmem:[%s7563_s3 + $0x1a8] ss:$16 sps:$4 sm:$0xff]  }
  0x14   :  { %1260 = vmatprep.subr.bf16.mxu0 %v4987_v20  ;;  %1424 = vmatprep.subr.bf16.mxu1 %v4989_v21  ;;  %v5041_v58 = vld [vmem:[%s7563_s3 + $0x1c4] ss:$16 sps:$4 sm:$0xff]   ;;  %v5043_v59 = vld [vmem:[%s7563_s3 + $0x1cc] ss:$16 sps:$4 sm:$0xff]   ;;  %v5045_v60 = vld [vmem:[%s7563_s3 + $0x1c0] ss:$16 sps:$4 sm:$0xff]  }
  0x15   :  { %1282 = vmatprep.mubr.bf16.mxu0 %v43_v48  ;;  %1446 = vmatprep.mubr.bf16.mxu1 %v43_v48  ;;  %v5046_v61 = vld [vmem:[%s7563_s3 + $0x1c8] ss:$16 sps:$4 sm:$0xff]   ;;  %v5047_v62 = vld [vmem:[%s7563_s3 + $0x1e4] ss:$16 sps:$4 sm:$0xff]   ;;  %v5049_v63 = vld [vmem:[%s7563_s3 + $0x1ec] ss:$16 sps:$4 sm:$0xff]  }
  0x16   :  { %v5051_v0 = vld [vmem:[%s7563_s3 + $0x1e0] ss:$16 sps:$4 sm:$0xff]   ;;  %v5052_v1 = vld [vmem:[%s7563_s3 + $0x1e8] ss:$16 sps:$4 sm:$0xff]   ;;  %v5055_v3 = vld [vmem:[%s7563_s3 + $0x204] ss:$16 sps:$4 sm:$0xff]  }
  0x17   :  { %1261 = vmatpush1.bf16.msra.mxu0 %v4991_v22  ;;  %1425 = vmatpush1.bf16.msra.mxu1 %v4992_v23  ;;  %v30_v2 = vld [vmem:[%s7561_s1] sm:$0xff]  ;;  %v5058_v4 = vld [vmem:[%s7563_s3 + $0x20c] ss:$16 sps:$4 sm:$0xff]   ;;  %v5056_v7 = vld [vmem:[%s7563_s3 + $0x208] ss:$16 sps:$4 sm:$0xff]  }
  0x18   :  { %1262 = vmatprep.subr.bf16.mxu0 %v4993_v24  ;;  %1426 = vmatprep.subr.bf16.mxu1 %v4995_v25  ;;  %v42_v5 = vpack.c.bf16 %v30_v2, %v30_v2  ;;  %v5053_v6 = vld [vmem:[%s7563_s3 + $0x200] ss:$16 sps:$4 sm:$0xff]   ;;  %v5061_v8 = vld [vmem:[%s7563_s3 + $0x224] ss:$16 sps:$4 sm:$0xff]   ;;  %v5064_v9 = vld [vmem:[%s7563_s3 + $0x22c] ss:$16 sps:$4 sm:$0xff]  }
  0x19   :  { %v5059_v10 = vld [vmem:[%s7563_s3 + $0x220] ss:$16 sps:$4 sm:$0xff]   ;;  %v5062_v11 = vld [vmem:[%s7563_s3 + $0x228] ss:$16 sps:$4 sm:$0xff]   ;;  %v5067_v12 = vld [vmem:[%s7563_s3 + $0x244] ss:$16 sps:$4 sm:$0xff]  }
  0x1a   :  { %v5070_v13 = vld [vmem:[%s7563_s3 + $0x24c] ss:$16 sps:$4 sm:$0xff]   ;;  %v5065_v14 = vld [vmem:[%s7563_s3 + $0x240] ss:$16 sps:$4 sm:$0xff]   ;;  %v5068_v15 = vld [vmem:[%s7563_s3 + $0x248] ss:$16 sps:$4 sm:$0xff]  }
  0x1b   :  { %1263 = vmatpush1.bf16.msra.mxu0 %v4997_v26  ;;  %1427 = vmatpush1.bf16.msra.mxu1 %v4998_v27  ;;  %v5073_v16 = vld [vmem:[%s7563_s3 + $0x264] ss:$16 sps:$4 sm:$0xff]   ;;  %v5076_v17 = vld [vmem:[%s7563_s3 + $0x26c] ss:$16 sps:$4 sm:$0xff]   ;;  %v5071_v18 = vld [vmem:[%s7563_s3 + $0x260] ss:$16 sps:$4 sm:$0xff]  }
  0x1c   :  { %1264 = vmatprep.subr.bf16.mxu0 %v4999_v28  ;;  %1428 = vmatprep.subr.bf16.mxu1 %v5001_v29  ;;  %v5074_v19 = vld [vmem:[%s7563_s3 + $0x268] ss:$16 sps:$4 sm:$0xff]   ;;  %v5079_v20 = vld [vmem:[%s7563_s3 + $0x284] ss:$16 sps:$4 sm:$0xff]   ;;  %v5082_v21 = vld [vmem:[%s7563_s3 + $0x28c] ss:$16 sps:$4 sm:$0xff]  }
  0x1d   :  { %v5077_v22 = vld [vmem:[%s7563_s3 + $0x280] ss:$16 sps:$4 sm:$0xff]   ;;  %v5080_v23 = vld [vmem:[%s7563_s3 + $0x288] ss:$16 sps:$4 sm:$0xff]   ;;  %v5085_v24 = vld [vmem:[%s7563_s3 + $0x2a4] ss:$16 sps:$4 sm:$0xff]  }
  0x1e   :  { %v5088_v25 = vld [vmem:[%s7563_s3 + $0x2ac] ss:$16 sps:$4 sm:$0xff]   ;;  %v5083_v26 = vld [vmem:[%s7563_s3 + $0x2a0] ss:$16 sps:$4 sm:$0xff]   ;;  %v5086_v27 = vld [vmem:[%s7563_s3 + $0x2a8] ss:$16 sps:$4 sm:$0xff]  }
  0x1f   :  { %1265 = vmatpush1.bf16.msra.mxu0 %v5003_v30  ;;  %1429 = vmatpush1.bf16.msra.mxu1 %v5004_v31  ;;  %v5091_v28 = vld [vmem:[%s7563_s3 + $0x2c4] ss:$16 sps:$4 sm:$0xff]   ;;  %v5094_v29 = vld [vmem:[%s7563_s3 + $0x2cc] ss:$16 sps:$4 sm:$0xff]   ;;  %v5089_v31 = vld [vmem:[%s7563_s3 + $0x2c0] ss:$16 sps:$4 sm:$0xff]  }
  0x20   :  { %1266 = vmatprep.subr.bf16.mxu0 %v5005_v32  ;;  %1430 = vmatprep.subr.bf16.mxu1 %v5007_v33  ;;  %v33_v30 = vld [vmem:[%s7561_s1 + $0x18] sm:$0xff]  ;;  %v5115_v46 = vld [vmem:[%s7563_s3 + $0x344] ss:$16 sps:$4 sm:$0xff]   ;;  %v5113_v48 = vld [vmem:[%s7563_s3 + $0x340] ss:$16 sps:$4 sm:$0xff]  }
  0x21   :  { %v45_v32 = vpack.c.bf16 %v33_v30, %v33_v30  ;;  %v5092_v33 = vld [vmem:[%s7563_s3 + $0x2c8] ss:$16 sps:$4 sm:$0xff]   ;;  %v5145_v2 = vld [vmem:[%s7563_s3 + $0x3e4] ss:$16 sps:$4 sm:$0xff]  }
  0x22   :  { %v5181_v30 = vld [vmem:[%s7563_s3 + $0x4a4] ss:$16 sps:$4 sm:$0xff]  }
  0x23   :  { %1267 = vmatpush1.bf16.msra.mxu0 %v5009_v34  ;;  %1431 = vmatpush1.bf16.msra.mxu1 %v5010_v35  ;;  %v5097_v34 = vld [vmem:[%s7563_s3 + $0x2e4] ss:$16 sps:$4 sm:$0xff]   ;;  %v5100_v35 = vld [vmem:[%s7563_s3 + $0x2ec] ss:$16 sps:$4 sm:$0xff]  }
  0x24   :  { %1268 = vmatprep.subr.bf16.mxu0 %v5011_v36  ;;  %1432 = vmatprep.subr.bf16.mxu1 %v5013_v37  ;;  %v5095_v36 = vld [vmem:[%s7563_s3 + $0x2e0] ss:$16 sps:$4 sm:$0xff]   ;;  %v5098_v37 = vld [vmem:[%s7563_s3 + $0x2e8] ss:$16 sps:$4 sm:$0xff]  }
  0x27   :  { %1269 = vmatpush1.bf16.msra.mxu0 %v5015_v38  ;;  %1433 = vmatpush1.bf16.msra.mxu1 %v5016_v39  ;;  %v5103_v38 = vld [vmem:[%s7563_s3 + $0x304] ss:$16 sps:$4 sm:$0xff]   ;;  %v5106_v39 = vld [vmem:[%s7563_s3 + $0x30c] ss:$16 sps:$4 sm:$0xff]  }
  0x28   :  { %1270 = vmatprep.subr.bf16.mxu0 %v5017_v40  ;;  %1434 = vmatprep.subr.bf16.mxu1 %v5019_v41  ;;  %v5101_v40 = vld [vmem:[%s7563_s3 + $0x300] ss:$16 sps:$4 sm:$0xff]   ;;  %v5104_v41 = vld [vmem:[%s7563_s3 + $0x308] ss:$16 sps:$4 sm:$0xff]  }
  0x2b   :  { %1271 = vmatpush1.bf16.msra.mxu0 %v5021_v42  ;;  %1435 = vmatpush1.bf16.msra.mxu1 %v5022_v43  ;;  %v5109_v42 = vld [vmem:[%s7563_s3 + $0x324] ss:$16 sps:$4 sm:$0xff]   ;;  %v5112_v43 = vld [vmem:[%s7563_s3 + $0x32c] ss:$16 sps:$4 sm:$0xff]  }
  0x2c   :  { %1272 = vmatprep.subr.bf16.mxu0 %v5023_v44  ;;  %1436 = vmatprep.subr.bf16.mxu1 %v5025_v45  ;;  %v5107_v44 = vld [vmem:[%s7563_s3 + $0x320] ss:$16 sps:$4 sm:$0xff]   ;;  %v5110_v45 = vld [vmem:[%s7563_s3 + $0x328] ss:$16 sps:$4 sm:$0xff]  }
  0x2f   :  { %1273 = vmatpush1.bf16.msra.mxu0 %v5027_v47  ;;  %1437 = vmatpush1.bf16.msra.mxu1 %v5028_v49  ;;  %v5118_v47 = vld [vmem:[%s7563_s3 + $0x34c] ss:$16 sps:$4 sm:$0xff]   ;;  %v5116_v49 = vld [vmem:[%s7563_s3 + $0x348] ss:$16 sps:$4 sm:$0xff]  }
  0x30   :  { %1274 = vmatprep.subr.bf16.mxu0 %v5029_v50  ;;  %1438 = vmatprep.subr.bf16.mxu1 %v5031_v51  ;;  %v5121_v50 = vld [vmem:[%s7563_s3 + $0x364] ss:$16 sps:$4 sm:$0xff]   ;;  %v5124_v51 = vld [vmem:[%s7563_s3 + $0x36c] ss:$16 sps:$4 sm:$0xff]  }
  0x33   :  { %1275 = vmatpush1.bf16.msra.mxu0 %v5033_v52  ;;  %1439 = vmatpush1.bf16.msra.mxu1 %v5034_v53  ;;  %v5119_v52 = vld [vmem:[%s7563_s3 + $0x360] ss:$16 sps:$4 sm:$0xff]   ;;  %v5122_v53 = vld [vmem:[%s7563_s3 + $0x368] ss:$16 sps:$4 sm:$0xff]  }
  0x34   :  { %1276 = vmatprep.subr.bf16.mxu0 %v5035_v54  ;;  %1440 = vmatprep.subr.bf16.mxu1 %v5037_v55  ;;  %v5127_v54 = vld [vmem:[%s7563_s3 + $0x384] ss:$16 sps:$4 sm:$0xff]   ;;  %v5130_v55 = vld [vmem:[%s7563_s3 + $0x38c] ss:$16 sps:$4 sm:$0xff]  }
  0x37   :  { %1277 = vmatpush1.bf16.msra.mxu0 %v5039_v56  ;;  %1441 = vmatpush1.bf16.msra.mxu1 %v5040_v57  ;;  %v5125_v56 = vld [vmem:[%s7563_s3 + $0x380] ss:$16 sps:$4 sm:$0xff]   ;;  %v5128_v57 = vld [vmem:[%s7563_s3 + $0x388] ss:$16 sps:$4 sm:$0xff]  }
  0x38   :  { %1278 = vmatprep.subr.bf16.mxu0 %v5041_v58  ;;  %1442 = vmatprep.subr.bf16.mxu1 %v5043_v59  ;;  %v5133_v58 = vld [vmem:[%s7563_s3 + $0x3a4] ss:$16 sps:$4 sm:$0xff]   ;;  %v5136_v59 = vld [vmem:[%s7563_s3 + $0x3ac] ss:$16 sps:$4 sm:$0xff]  }
  0x3b   :  { %1279 = vmatpush1.bf16.msra.mxu0 %v5045_v60  ;;  %1443 = vmatpush1.bf16.msra.mxu1 %v5046_v61  ;;  %v5131_v60 = vld [vmem:[%s7563_s3 + $0x3a0] ss:$16 sps:$4 sm:$0xff]   ;;  %v5134_v61 = vld [vmem:[%s7563_s3 + $0x3a8] ss:$16 sps:$4 sm:$0xff]  }
  0x3c   :  { %1280 = vmatprep.subr.bf16.mxu0 %v5047_v62  ;;  %1444 = vmatprep.subr.bf16.mxu1 %v5049_v63  ;;  %v5139_v62 = vld [vmem:[%s7563_s3 + $0x3c4] ss:$16 sps:$4 sm:$0xff]   ;;  %v5142_v63 = vld [vmem:[%s7563_s3 + $0x3cc] ss:$16 sps:$4 sm:$0xff]  }
  0x3f   :  { %1281 = vmatpush1.bf16.msra.mxu0 %v5051_v0  ;;  %1445 = vmatpush1.bf16.msra.mxu1 %v5052_v1  ;;  %v5137_v0 = vld [vmem:[%s7563_s3 + $0x3c0] ss:$16 sps:$4 sm:$0xff]   ;;  %v5140_v1 = vld [vmem:[%s7563_s3 + $0x3c8] ss:$16 sps:$4 sm:$0xff]  }
  0x40   :  { %1291 = vmatprep.subr.bf16.mxu0 %v5055_v3  ;;  %1455 = vmatprep.subr.bf16.mxu1 %v5058_v4  ;;  %v5148_v3 = vld [vmem:[%s7563_s3 + $0x3ec] ss:$16 sps:$4 sm:$0xff]   ;;  %v5143_v4 = vld [vmem:[%s7563_s3 + $0x3e0] ss:$16 sps:$4 sm:$0xff]  }
  0x42   :  { %1283 = vmatmul.mubr.bf16.vlgmr.msra.gmra.mrb[0].mxu0 %v42_v5  ;;  %1447 = vmatmul.mubr.bf16.vlgmr.msra.gmra.mrb[0].mxu1 %v42_v5  ;;  %v5146_v5 = vld [vmem:[%s7563_s3 + $0x3e8] ss:$16 sps:$4 sm:$0xff]  }
  0x43   :  { %1292 = vmatpush1.bf16.msra.mxu0 %v5053_v6  ;;  %1456 = vmatpush1.bf16.msra.mxu1 %v5056_v7  ;;  %v5151_v6 = vld [vmem:[%s7563_s3 + $0x404] ss:$16 sps:$4 sm:$0xff]  }
  0x44   :  { %1293 = vmatprep.subr.bf16.mxu0 %v5061_v8  ;;  %1457 = vmatprep.subr.bf16.mxu1 %v5064_v9  ;;  %v32_v7 = vld [vmem:[%s7561_s1 + $0x10] sm:$0xff]  ;;  %v5154_v8 = vld [vmem:[%s7563_s3 + $0x40c] ss:$16 sps:$4 sm:$0xff]  }
  0x45   :  { %1323 = vmatprep.mubr.bf16.mxu0 %v45_v32  ;;  %1487 = vmatprep.mubr.bf16.mxu1 %v45_v32  ;;  %v5149_v9 = vld [vmem:[%s7563_s3 + $0x400] ss:$16 sps:$4 sm:$0xff]  }
  0x46   :  { %v5179_v32 = vld [vmem:[%s7563_s3 + $0x4a0] ss:$16 sps:$4 sm:$0xff]  }
  0x47   :  { %1294 = vmatpush1.bf16.msra.mxu0 %v5059_v10  ;;  %1458 = vmatpush1.bf16.msra.mxu1 %v5062_v11  ;;  %v44_v10 = vpack.c.bf16 %v32_v7, %v32_v7  ;;  %v5152_v11 = vld [vmem:[%s7563_s3 + $0x408] ss:$16 sps:$4 sm:$0xff]   ;;  %v5244_v7 = vld [vmem:[%s7563_s3 + $0x5ec] ss:$16 sps:$4 sm:$0xff]  }
  0x48   :  { %1295 = vmatprep.subr.bf16.mxu0 %v5067_v12  ;;  %1459 = vmatprep.subr.bf16.mxu1 %v5070_v13  ;;  %v5157_v12 = vld [vmem:[%s7563_s3 + $0x424] ss:$16 sps:$4 sm:$0xff]   ;;  %v5160_v13 = vld [vmem:[%s7563_s3 + $0x42c] ss:$16 sps:$4 sm:$0xff]  }
  0x4b   :  { %1296 = vmatpush1.bf16.msra.mxu0 %v5065_v14  ;;  %1460 = vmatpush1.bf16.msra.mxu1 %v5068_v15  ;;  %v35_v14 = vld [vmem:[%s7561_s1 + $0x28] sm:$0xff] }
  0x4c   :  { %1297 = vmatprep.subr.bf16.mxu0 %v5073_v16  ;;  %1461 = vmatprep.subr.bf16.mxu1 %v5076_v17  ;;  %v47_v15 = vpack.c.bf16 %v35_v14, %v35_v14  ;;  %v5155_v16 = vld [vmem:[%s7563_s3 + $0x420] ss:$16 sps:$4 sm:$0xff]   ;;  %v5158_v17 = vld [vmem:[%s7563_s3 + $0x428] ss:$16 sps:$4 sm:$0xff]  }
  0x4d   :  { %v5248_v14 = vld [vmem:[%s7563_s3 + $0x608] ss:$16 sps:$4 sm:$0xff]  }
  0x4f   :  { %1298 = vmatpush1.bf16.msra.mxu0 %v5071_v18  ;;  %1462 = vmatpush1.bf16.msra.mxu1 %v5074_v19  ;;  %v5163_v18 = vld [vmem:[%s7563_s3 + $0x444] ss:$16 sps:$4 sm:$0xff]   ;;  %v5166_v19 = vld [vmem:[%s7563_s3 + $0x44c] ss:$16 sps:$4 sm:$0xff]  }
  0x50   :  { %1299 = vmatprep.subr.bf16.mxu0 %v5079_v20  ;;  %1463 = vmatprep.subr.bf16.mxu1 %v5082_v21  ;;  %v5161_v20 = vld [vmem:[%s7563_s3 + $0x440] ss:$16 sps:$4 sm:$0xff]   ;;  %v5164_v21 = vld [vmem:[%s7563_s3 + $0x448] ss:$16 sps:$4 sm:$0xff]  }
  0x53   :  { %1300 = vmatpush1.bf16.msra.mxu0 %v5077_v22  ;;  %1464 = vmatpush1.bf16.msra.mxu1 %v5080_v23  ;;  %v5169_v22 = vld [vmem:[%s7563_s3 + $0x464] ss:$16 sps:$4 sm:$0xff]   ;;  %v5172_v23 = vld [vmem:[%s7563_s3 + $0x46c] ss:$16 sps:$4 sm:$0xff]  }
  0x54   :  { %1301 = vmatprep.subr.bf16.mxu0 %v5085_v24  ;;  %1465 = vmatprep.subr.bf16.mxu1 %v5088_v25  ;;  %v5167_v24 = vld [vmem:[%s7563_s3 + $0x460] ss:$16 sps:$4 sm:$0xff]   ;;  %v5170_v25 = vld [vmem:[%s7563_s3 + $0x468] ss:$16 sps:$4 sm:$0xff]  }
  0x57   :  { %1302 = vmatpush1.bf16.msra.mxu0 %v5083_v26  ;;  %1466 = vmatpush1.bf16.msra.mxu1 %v5086_v27  ;;  %v5175_v26 = vld [vmem:[%s7563_s3 + $0x484] ss:$16 sps:$4 sm:$0xff]   ;;  %v5178_v27 = vld [vmem:[%s7563_s3 + $0x48c] ss:$16 sps:$4 sm:$0xff]  }
  0x58   :  { %1303 = vmatprep.subr.bf16.mxu0 %v5091_v28  ;;  %1467 = vmatprep.subr.bf16.mxu1 %v5094_v29  ;;  %v5173_v28 = vld [vmem:[%s7563_s3 + $0x480] ss:$16 sps:$4 sm:$0xff]   ;;  %v5176_v29 = vld [vmem:[%s7563_s3 + $0x488] ss:$16 sps:$4 sm:$0xff]  }
  0x5b   :  { %1304 = vmatpush1.bf16.msra.mxu0 %v5089_v31  ;;  %1468 = vmatpush1.bf16.msra.mxu1 %v5092_v33  ;;  %v5184_v31 = vld [vmem:[%s7563_s3 + $0x4ac] ss:$16 sps:$4 sm:$0xff]   ;;  %v5182_v33 = vld [vmem:[%s7563_s3 + $0x4a8] ss:$16 sps:$4 sm:$0xff]  }
  0x5c   :  { %1305 = vmatprep.subr.bf16.mxu0 %v5097_v34  ;;  %1469 = vmatprep.subr.bf16.mxu1 %v5100_v35  ;;  %v5187_v34 = vld [vmem:[%s7563_s3 + $0x4c4] ss:$16 sps:$4 sm:$0xff]   ;;  %v5190_v35 = vld [vmem:[%s7563_s3 + $0x4cc] ss:$16 sps:$4 sm:$0xff]  }
  0x5f   :  { %1306 = vmatpush1.bf16.msra.mxu0 %v5095_v36  ;;  %1470 = vmatpush1.bf16.msra.mxu1 %v5098_v37  ;;  %v5185_v36 = vld [vmem:[%s7563_s3 + $0x4c0] ss:$16 sps:$4 sm:$0xff]   ;;  %v5188_v37 = vld [vmem:[%s7563_s3 + $0x4c8] ss:$16 sps:$4 sm:$0xff]  }
  0x60   :  { %1307 = vmatprep.subr.bf16.mxu0 %v5103_v38  ;;  %1471 = vmatprep.subr.bf16.mxu1 %v5106_v39  ;;  %v5193_v38 = vld [vmem:[%s7563_s3 + $0x4e4] ss:$16 sps:$4 sm:$0xff]   ;;  %v5196_v39 = vld [vmem:[%s7563_s3 + $0x4ec] ss:$16 sps:$4 sm:$0xff]  }
  0x63   :  { %1308 = vmatpush1.bf16.msra.mxu0 %v5101_v40  ;;  %1472 = vmatpush1.bf16.msra.mxu1 %v5104_v41  ;;  %v5191_v40 = vld [vmem:[%s7563_s3 + $0x4e0] ss:$16 sps:$4 sm:$0xff]   ;;  %v5194_v41 = vld [vmem:[%s7563_s3 + $0x4e8] ss:$16 sps:$4 sm:$0xff]  }
  0x64   :  { %1309 = vmatprep.subr.bf16.mxu0 %v5109_v42  ;;  %1473 = vmatprep.subr.bf16.mxu1 %v5112_v43  ;;  %v5199_v42 = vld [vmem:[%s7563_s3 + $0x504] ss:$16 sps:$4 sm:$0xff]   ;;  %v5202_v43 = vld [vmem:[%s7563_s3 + $0x50c] ss:$16 sps:$4 sm:$0xff]  }
  0x67   :  { %1310 = vmatpush1.bf16.msra.mxu0 %v5107_v44  ;;  %1474 = vmatpush1.bf16.msra.mxu1 %v5110_v45  ;;  %v5197_v44 = vld [vmem:[%s7563_s3 + $0x500] ss:$16 sps:$4 sm:$0xff]   ;;  %v5200_v45 = vld [vmem:[%s7563_s3 + $0x508] ss:$16 sps:$4 sm:$0xff]  }
  0x68   :  { %1311 = vmatprep.subr.bf16.mxu0 %v5115_v46  ;;  %1475 = vmatprep.subr.bf16.mxu1 %v5118_v47  ;;  %v5205_v46 = vld [vmem:[%s7563_s3 + $0x524] ss:$16 sps:$4 sm:$0xff]   ;;  %v5208_v47 = vld [vmem:[%s7563_s3 + $0x52c] ss:$16 sps:$4 sm:$0xff]  }
  0x6b   :  { %1312 = vmatpush1.bf16.msra.mxu0 %v5113_v48  ;;  %1476 = vmatpush1.bf16.msra.mxu1 %v5116_v49  ;;  %v5203_v48 = vld [vmem:[%s7563_s3 + $0x520] ss:$16 sps:$4 sm:$0xff]   ;;  %v5206_v49 = vld [vmem:[%s7563_s3 + $0x528] ss:$16 sps:$4 sm:$0xff]  }
  0x6c   :  { %1313 = vmatprep.subr.bf16.mxu0 %v5121_v50  ;;  %1477 = vmatprep.subr.bf16.mxu1 %v5124_v51  ;;  %v5211_v50 = vld [vmem:[%s7563_s3 + $0x544] ss:$16 sps:$4 sm:$0xff]   ;;  %v5214_v51 = vld [vmem:[%s7563_s3 + $0x54c] ss:$16 sps:$4 sm:$0xff]  }
  0x6f   :  { %1314 = vmatpush1.bf16.msra.mxu0 %v5119_v52  ;;  %1478 = vmatpush1.bf16.msra.mxu1 %v5122_v53  ;;  %v5209_v52 = vld [vmem:[%s7563_s3 + $0x540] ss:$16 sps:$4 sm:$0xff]   ;;  %v5212_v53 = vld [vmem:[%s7563_s3 + $0x548] ss:$16 sps:$4 sm:$0xff]  }
  0x70   :  { %1315 = vmatprep.subr.bf16.mxu0 %v5127_v54  ;;  %1479 = vmatprep.subr.bf16.mxu1 %v5130_v55  ;;  %v5217_v54 = vld [vmem:[%s7563_s3 + $0x564] ss:$16 sps:$4 sm:$0xff]   ;;  %v5220_v55 = vld [vmem:[%s7563_s3 + $0x56c] ss:$16 sps:$4 sm:$0xff]  }
  0x73   :  { %1316 = vmatpush1.bf16.msra.mxu0 %v5125_v56  ;;  %1480 = vmatpush1.bf16.msra.mxu1 %v5128_v57  ;;  %v5215_v56 = vld [vmem:[%s7563_s3 + $0x560] ss:$16 sps:$4 sm:$0xff]   ;;  %v5218_v57 = vld [vmem:[%s7563_s3 + $0x568] ss:$16 sps:$4 sm:$0xff]  }
  0x74   :  { %1317 = vmatprep.subr.bf16.mxu0 %v5133_v58  ;;  %1481 = vmatprep.subr.bf16.mxu1 %v5136_v59  ;;  %v5223_v58 = vld [vmem:[%s7563_s3 + $0x584] ss:$16 sps:$4 sm:$0xff]   ;;  %v5226_v59 = vld [vmem:[%s7563_s3 + $0x58c] ss:$16 sps:$4 sm:$0xff]  }
  0x77   :  { %1318 = vmatpush1.bf16.msra.mxu0 %v5131_v60  ;;  %1482 = vmatpush1.bf16.msra.mxu1 %v5134_v61  ;;  %v5221_v60 = vld [vmem:[%s7563_s3 + $0x580] ss:$16 sps:$4 sm:$0xff]   ;;  %v5224_v61 = vld [vmem:[%s7563_s3 + $0x588] ss:$16 sps:$4 sm:$0xff]  }
  0x78   :  { %1319 = vmatprep.subr.bf16.mxu0 %v5139_v62  ;;  %1483 = vmatprep.subr.bf16.mxu1 %v5142_v63  ;;  %v5229_v62 = vld [vmem:[%s7563_s3 + $0x5a4] ss:$16 sps:$4 sm:$0xff]   ;;  %v5232_v63 = vld [vmem:[%s7563_s3 + $0x5ac] ss:$16 sps:$4 sm:$0xff]  }
  0x7b   :  { %1320 = vmatpush1.bf16.msra.mxu0 %v5137_v0  ;;  %1484 = vmatpush1.bf16.msra.mxu1 %v5140_v1  ;;  %v5227_v0 = vld [vmem:[%s7563_s3 + $0x5a0] ss:$16 sps:$4 sm:$0xff]   ;;  %v5230_v1 = vld [vmem:[%s7563_s3 + $0x5a8] ss:$16 sps:$4 sm:$0xff]  }
  0x7c   :  { %1321 = vmatprep.subr.bf16.mxu0 %v5145_v2  ;;  %1485 = vmatprep.subr.bf16.mxu1 %v5148_v3  ;;  %v5235_v2 = vld [vmem:[%s7563_s3 + $0x5c4] ss:$16 sps:$4 sm:$0xff]   ;;  %v5238_v3 = vld [vmem:[%s7563_s3 + $0x5cc] ss:$16 sps:$4 sm:$0xff]  }
  0x7f   :  { %1322 = vmatpush1.bf16.msra.mxu0 %v5143_v4  ;;  %1486 = vmatpush1.bf16.msra.mxu1 %v5146_v5  ;;  %v5233_v4 = vld [vmem:[%s7563_s3 + $0x5c0] ss:$16 sps:$4 sm:$0xff]   ;;  %v5236_v5 = vld [vmem:[%s7563_s3 + $0x5c8] ss:$16 sps:$4 sm:$0xff]  }
  0x80   :  { %1332 = vmatprep.subr.bf16.mxu0 %v5151_v6  ;;  %1496 = vmatprep.subr.bf16.mxu1 %v5154_v8  ;;  %v5241_v6 = vld [vmem:[%s7563_s3 + $0x5e4] ss:$16 sps:$4 sm:$0xff]   ;;  %v5239_v8 = vld [vmem:[%s7563_s3 + $0x5e0] ss:$16 sps:$4 sm:$0xff]  }
  0x82   :  { %1324 = vmatmul.mubr.bf16.vlgmr.msra.gmra.mrb[0].mxu0 %v44_v10  ;;  %1488 = vmatmul.mubr.bf16.vlgmr.msra.gmra.mrb[0].mxu1 %v44_v10  ;;  %v34_v10 = vld [vmem:[%s7561_s1 + $0x20] sm:$0xff] }
  0x83   :  { %1333 = vmatpush1.bf16.msra.mxu0 %v5149_v9  ;;  %1497 = vmatpush1.bf16.msra.mxu1 %v5152_v11  ;;  %v5242_v9 = vld [vmem:[%s7563_s3 + $0x5e8] ss:$16 sps:$4 sm:$0xff]   ;;  %v5247_v11 = vld [vmem:[%s7563_s3 + $0x604] ss:$16 sps:$4 sm:$0xff]  }
  0x84   :  { %1334 = vmatprep.subr.bf16.mxu0 %v5157_v12  ;;  %1498 = vmatprep.subr.bf16.mxu1 %v5160_v13  ;;  %v5250_v12 = vld [vmem:[%s7563_s3 + $0x60c] ss:$16 sps:$4 sm:$0xff]   ;;  %v5245_v13 = vld [vmem:[%s7563_s3 + $0x600] ss:$16 sps:$4 sm:$0xff]  }
  0x85   :  { %1364 = vmatprep.mubr.bf16.mxu0 %v47_v15  ;;  %1528 = vmatprep.mubr.bf16.mxu1 %v47_v15  ;;  %v46_v15 = vpack.c.bf16 %v34_v10, %v34_v10 }
  0x87   :  { %1335 = vmatpush1.bf16.msra.mxu0 %v5155_v16  ;;  %1499 = vmatpush1.bf16.msra.mxu1 %v5158_v17  ;;  %v5253_v16 = vld [vmem:[%s7564_s4 + $0x4] ss:$8 sps:$4 sm:$0xff]   ;;  %v5766_v17 = vmov 0  }
  0x88   :  { %1336 = vmatprep.subr.bf16.mxu0 %v5163_v18  ;;  %1500 = vmatprep.subr.bf16.mxu1 %v5166_v19  ;;  %v36_v18 = vld [vmem:[%s7561_s1 + $0x30] sm:$0xff]  ;;  %v5251_v19 = vld [vmem:[%s7564_s4] ss:$8 sps:$4 sm:$0xff]  }
  0x8b   :  { %1337 = vmatpush1.bf16.msra.mxu0 %v5161_v20  ;;  %1501 = vmatpush1.bf16.msra.mxu1 %v5164_v21  ;;  %v48_v20 = vpack.c.bf16 %v36_v18, %v36_v18  ;;  %v5256_v21 = vld [vmem:[%s7564_s4 + $0x14] ss:$8 sps:$4 sm:$0xff]  }
  0x8c   :  { %1338 = vmatprep.subr.bf16.mxu0 %v5169_v22  ;;  %1502 = vmatprep.subr.bf16.mxu1 %v5172_v23  ;;  %v5254_v22 = vld [vmem:[%s7564_s4 + $0x10] ss:$8 sps:$4 sm:$0xff]   ;;  %v5259_v23 = vld [vmem:[%s7564_s4 + $0x24] ss:$8 sps:$4 sm:$0xff]  }
  0x8f   :  { %1339 = vmatpush1.bf16.msra.mxu0 %v5167_v24  ;;  %1503 = vmatpush1.bf16.msra.mxu1 %v5170_v25  ;;  %v5257_v24 = vld [vmem:[%s7564_s4 + $0x20] ss:$8 sps:$4 sm:$0xff]   ;;  %v5262_v25 = vld [vmem:[%s7564_s4 + $0x34] ss:$8 sps:$4 sm:$0xff]  }
  0x90   :  { %1340 = vmatprep.subr.bf16.mxu0 %v5175_v26  ;;  %1504 = vmatprep.subr.bf16.mxu1 %v5178_v27  ;;  %v5260_v26 = vld [vmem:[%s7564_s4 + $0x30] ss:$8 sps:$4 sm:$0xff]   ;;  %v5265_v27 = vld [vmem:[%s7564_s4 + $0x44] ss:$8 sps:$4 sm:$0xff]  }
  0x93   :  { %1341 = vmatpush1.bf16.msra.mxu0 %v5173_v28  ;;  %1505 = vmatpush1.bf16.msra.mxu1 %v5176_v29  ;;  %v5263_v28 = vld [vmem:[%s7564_s4 + $0x40] ss:$8 sps:$4 sm:$0xff]   ;;  %v5268_v29 = vld [vmem:[%s7564_s4 + $0x54] ss:$8 sps:$4 sm:$0xff]  }
  0x94   :  { %1342 = vmatprep.subr.bf16.mxu0 %v5181_v30  ;;  %1506 = vmatprep.subr.bf16.mxu1 %v5184_v31  ;;  %v5266_v30 = vld [vmem:[%s7564_s4 + $0x50] ss:$8 sps:$4 sm:$0xff]   ;;  %v5271_v31 = vld [vmem:[%s7564_s4 + $0x64] ss:$8 sps:$4 sm:$0xff]  }
  0x97   :  { %1343 = vmatpush1.bf16.msra.mxu0 %v5179_v32  ;;  %1507 = vmatpush1.bf16.msra.mxu1 %v5182_v33  ;;  %v5269_v32 = vld [vmem:[%s7564_s4 + $0x60] ss:$8 sps:$4 sm:$0xff]   ;;  %v5274_v33 = vld [vmem:[%s7564_s4 + $0x74] ss:$8 sps:$4 sm:$0xff]  }
  0x98   :  { %1344 = vmatprep.subr.bf16.mxu0 %v5187_v34  ;;  %1508 = vmatprep.subr.bf16.mxu1 %v5190_v35  ;;  %v5272_v34 = vld [vmem:[%s7564_s4 + $0x70] ss:$8 sps:$4 sm:$0xff]   ;;  %v5277_v35 = vld [vmem:[%s7564_s4 + $0x84] ss:$8 sps:$4 sm:$0xff]  }
  0x9b   :  { %1345 = vmatpush1.bf16.msra.mxu0 %v5185_v36  ;;  %1509 = vmatpush1.bf16.msra.mxu1 %v5188_v37  ;;  %v5275_v36 = vld [vmem:[%s7564_s4 + $0x80] ss:$8 sps:$4 sm:$0xff]   ;;  %v5280_v37 = vld [vmem:[%s7564_s4 + $0x94] ss:$8 sps:$4 sm:$0xff]  }
  0x9c   :  { %1346 = vmatprep.subr.bf16.mxu0 %v5193_v38  ;;  %1510 = vmatprep.subr.bf16.mxu1 %v5196_v39  ;;  %v5278_v38 = vld [vmem:[%s7564_s4 + $0x90] ss:$8 sps:$4 sm:$0xff]   ;;  %v5283_v39 = vld [vmem:[%s7564_s4 + $0xa4] ss:$8 sps:$4 sm:$0xff]  }
  0x9f   :  { %1347 = vmatpush1.bf16.msra.mxu0 %v5191_v40  ;;  %1511 = vmatpush1.bf16.msra.mxu1 %v5194_v41  ;;  %v5281_v40 = vld [vmem:[%s7564_s4 + $0xa0] ss:$8 sps:$4 sm:$0xff]   ;;  %v5286_v41 = vld [vmem:[%s7564_s4 + $0xb4] ss:$8 sps:$4 sm:$0xff]  }
  0xa0   :  { %1348 = vmatprep.subr.bf16.mxu0 %v5199_v42  ;;  %1512 = vmatprep.subr.bf16.mxu1 %v5202_v43  ;;  %v5284_v42 = vld [vmem:[%s7564_s4 + $0xb0] ss:$8 sps:$4 sm:$0xff]   ;;  %v5289_v43 = vld [vmem:[%s7564_s4 + $0xc4] ss:$8 sps:$4 sm:$0xff]  }
  0xa3   :  { %1349 = vmatpush1.bf16.msra.mxu0 %v5197_v44  ;;  %1513 = vmatpush1.bf16.msra.mxu1 %v5200_v45  ;;  %v5287_v44 = vld [vmem:[%s7564_s4 + $0xc0] ss:$8 sps:$4 sm:$0xff]   ;;  %v5292_v45 = vld [vmem:[%s7564_s4 + $0xd4] ss:$8 sps:$4 sm:$0xff]  }
  0xa4   :  { %1350 = vmatprep.subr.bf16.mxu0 %v5205_v46  ;;  %1514 = vmatprep.subr.bf16.mxu1 %v5208_v47  ;;  %v5290_v46 = vld [vmem:[%s7564_s4 + $0xd0] ss:$8 sps:$4 sm:$0xff]  }
  0xa7   :  { %1351 = vmatpush1.bf16.msra.mxu0 %v5203_v48  ;;  %1515 = vmatpush1.bf16.msra.mxu1 %v5206_v49 }
  0xa8   :  { %1352 = vmatprep.subr.bf16.mxu0 %v5211_v50  ;;  %1516 = vmatprep.subr.bf16.mxu1 %v5214_v51 }
  0xab   :  { %1353 = vmatpush1.bf16.msra.mxu0 %v5209_v52  ;;  %1517 = vmatpush1.bf16.msra.mxu1 %v5212_v53 }
  0xac   :  { %1354 = vmatprep.subr.bf16.mxu0 %v5217_v54  ;;  %1518 = vmatprep.subr.bf16.mxu1 %v5220_v55 }
  0xaf   :  { %1355 = vmatpush1.bf16.msra.mxu0 %v5215_v56  ;;  %1519 = vmatpush1.bf16.msra.mxu1 %v5218_v57 }
  0xb0   :  { %1356 = vmatprep.subr.bf16.mxu0 %v5223_v58  ;;  %1520 = vmatprep.subr.bf16.mxu1 %v5226_v59 }
  0xb3   :  { %1357 = vmatpush1.bf16.msra.mxu0 %v5221_v60  ;;  %1521 = vmatpush1.bf16.msra.mxu1 %v5224_v61 }
  0xb4   :  { %1358 = vmatprep.subr.bf16.mxu0 %v5229_v62  ;;  %1522 = vmatprep.subr.bf16.mxu1 %v5232_v63 }
  0xb7   :  { %1359 = vmatpush1.bf16.msra.mxu0 %v5227_v0  ;;  %1523 = vmatpush1.bf16.msra.mxu1 %v5230_v1 }
  0xb8   :  { %1360 = vmatprep.subr.bf16.mxu0 %v5235_v2  ;;  %1524 = vmatprep.subr.bf16.mxu1 %v5238_v3 }
  0xbb   :  { %1361 = vmatpush1.bf16.msra.mxu0 %v5233_v4  ;;  %1525 = vmatpush1.bf16.msra.mxu1 %v5236_v5 }
  0xbc   :  { %1362 = vmatprep.subr.bf16.mxu0 %v5241_v6  ;;  %1526 = vmatprep.subr.bf16.mxu1 %v5244_v7 }
  0xbf   :  { %1363 = vmatpush1.bf16.msra.mxu0 %v5239_v8  ;;  %1527 = vmatpush1.bf16.msra.mxu1 %v5242_v9 }
  0xc0   :  { %1373 = vmatprep.subr.bf16.mxu0 %v5247_v11  ;;  %1537 = vmatprep.subr.bf16.mxu1 %v5250_v12 }
  0xc2   :  { %1365 = vmatmul.mubr.bf16.vlgmr.msra.gmra.mrb[0].mxu0 %v46_v15  ;;  %1529 = vmatmul.mubr.bf16.vlgmr.msra.gmra.mrb[0].mxu1 %v46_v15 }
  0xc3   :  { %1374 = vmatpush1.bf16.msra.mxu0 %v5245_v13  ;;  %1538 = vmatpush1.bf16.msra.mxu1 %v5248_v14 }
  0xc4   :  { %1405 = vmatprep.mubr.bf16.mxu0 %v5766_v17  ;;  %1569 = vmatprep.mubr.bf16.mxu1 %v5766_v17 }
  0xc5   :  { %1981 = vmatprep.subr.bf16.mxu0 %v5253_v16 }
  0xce   :  { %4531 = vmatmul.mubr.msk.bf16.vlgmr.msra.gmra.mrb[0].mxu0 %vm1246_vm0, %v48_v20  ;;  %4532 = vmatmul.mubr.msk.bf16.vlgmr.msra.gmra.mrb[0].mxu1 %vm1246_vm0, %v48_v20 }
  0xcf   :  { %1982 = vmatpush1.bf16.msra.mxu0 %v5251_v19  ;;  %2314 = vmatprep.mubr.bf16.mxu1 %v5766_v17 }
  0xd0   :  { %1983 = vmatprep.subr.bf16.mxu0 %v5256_v21 }
  0xd3   :  { %1984 = vmatpush1.bf16.msra.mxu0 %v5254_v22 }
  0xd4   :  { %1985 = vmatprep.subr.bf16.mxu0 %v5259_v23 }
  0xd7   :  { %1986 = vmatpush1.bf16.msra.mxu0 %v5257_v24 }
  0xd8   :  { %1987 = vmatprep.subr.bf16.mxu0 %v5262_v25 }
  0xdb   :  { %1988 = vmatpush1.bf16.msra.mxu0 %v5260_v26 }
  0xdc   :  { %1989 = vmatprep.subr.bf16.mxu0 %v5265_v27 }
  0xdf   :  { %1990 = vmatpush1.bf16.msra.mxu0 %v5263_v28 }
  0xe0   :  { %1991 = vmatprep.subr.bf16.mxu0 %v5268_v29 }
  0xe3   :  { %1992 = vmatpush1.bf16.msra.mxu0 %v5266_v30 }
  0xe4   :  { %1993 = vmatprep.subr.bf16.mxu0 %v5271_v31 }
  0xe7   :  { %1994 = vmatpush1.bf16.msra.mxu0 %v5269_v32 }
  0xe8   :  { %1995 = vmatprep.subr.bf16.mxu0 %v5274_v33 }
  0xeb   :  { %1996 = vmatpush1.bf16.msra.mxu0 %v5272_v34 }
  0xec   :  { %1997 = vmatprep.subr.bf16.mxu0 %v5277_v35 }
  0xef   :  { %1998 = vmatpush1.bf16.msra.mxu0 %v5275_v36 }
  0xf0   :  { %1999 = vmatprep.subr.bf16.mxu0 %v5280_v37 }
  0xf3   :  { %2000 = vmatpush1.bf16.msra.mxu0 %v5278_v38 }
  0xf4   :  { %2001 = vmatprep.subr.bf16.mxu0 %v5283_v39 }
  0xf7   :  { %2002 = vmatpush1.bf16.msra.mxu0 %v5281_v40 }
  0xf8   :  { %2003 = vmatprep.subr.bf16.mxu0 %v5286_v41 }
  0xfb   :  { %2004 = vmatpush1.bf16.msra.mxu0 %v5284_v42 }
  0xfc   :  { %2005 = vmatprep.subr.bf16.mxu0 %v5289_v43 }
  0xff   :  { %2006 = vmatpush1.bf16.msra.mxu0 %v5287_v44 }
 0x100   :  { %2007 = vmatprep.subr.bf16.mxu0 %v5292_v45 }
 0x103   :  { %2008 = vmatpush1.bf16.msra.mxu0 %v5290_v46 }
 0x104   :  { %14 = vsyncpa [#allocation5], 0  ;;  %v5295_v47 = vld [vmem:[%s7564_s4 + $0xe4] ss:$8 sps:$4 sm:$0xff]   ;;  %v5293_v48 = vld [vmem:[%s7564_s4 + $0xe0] ss:$8 sps:$4 sm:$0xff]   ;;  %v246_v56 = vlaneseq }
 0x105   :  { %2009 = vmatprep.subr.bf16.mxu0 %v5295_v47  ;;  %v5298_v49 = vld [vmem:[%s7564_s4 + $0xf4] ss:$8 sps:$4 sm:$0xff]   ;;  %v5296_v50 = vld [vmem:[%s7564_s4 + $0xf0] ss:$8 sps:$4 sm:$0xff]   ;;  %v5301_v51 = vld [vmem:[%s7564_s4 + $0x104] ss:$8 sps:$4 sm:$0xff]  }
 0x106   :  { %v5347_v52 = vld [vmem:[%s7565_s5] ss:$16 sps:$4 sm:$0xff]   ;;  %v5349_v53 = vld [vmem:[%s7565_s5 + $0x4] ss:$16 sps:$4 sm:$0xff]   ;;  %v6539_v57 = vshrl.u32 %v246_v56, 7  ;;  %s5754_s9 = scalar_lea.hbm %s7568_s8, 16 }
 0x107   :  { %2010 = vmatpush1.bf16.msra.mxu0 %v5293_v48  ;;  %v5352_v54 = vld [vmem:[%s7565_s5 + $0x24] ss:$16 sps:$4 sm:$0xff]   ;;  %2282 = vmatprep.subr.bf16.mxu1 %v5349_v53  ;;  %v5350_v55 = vld [vmem:[%s7565_s5 + $0x20] ss:$16 sps:$4 sm:$0xff]   ;;  %p5755_p0 = scmp.ne.s32.totalorder %s7568_s8, %s5754_s9  ;;  %p5758_p1 = scmp.lt.u32.totalorder %s5754_s9, %s7568_s8 }
 0x108   :  { %2011 = vmatprep.subr.bf16.mxu0 %v5298_v49  ;;  %2283 = vmatpush1.bf16.msra.mxu1 %v5347_v52  ;;  %v6542_v58 = vsub.s32 0, %v6539_v57  ;;  %v6547_v59 = vld [vmem:[%s7567_s7] sm:$0xf]  ;;  %v6550_v60 = vsub.s32 1, %v6539_v57  ;;  %v6553_v61 = vsub.s32 3, %v6539_v57  ;;  %v6639_v44 = vsub.s32 2, %v6539_v57 }
 0x109   :  { %2284 = vmatprep.subr.bf16.mxu1 %v5352_v54  ;;  %v5299_v16 = vld [vmem:[%s7564_s4 + $0x100] ss:$8 sps:$4 sm:$0xff]   ;;  %v5304_v19 = vld [vmem:[%s7564_s4 + $0x114] ss:$8 sps:$4 sm:$0xff]   ;;  %v5302_v21 = vld [vmem:[%s7564_s4 + $0x110] ss:$8 sps:$4 sm:$0xff]   ;;  %p5760_p2 = pnand %p5758_p1, %p5755_p0 }
 0x10a   :  { %v249_v62 = vrot.slane %v6547_v59, %v6542_v58  ;;  %v253_v63 = vrot.slane %v6547_v59, %v6550_v60  ;;  %v261_v0 = vrot.slane %v6547_v59, %v6553_v61  ;;  %v5307_v22 = vld [vmem:[%s7564_s4 + $0x124] ss:$8 sps:$4 sm:$0xff]   ;;  %v5305_v23 = vld [vmem:[%s7564_s4 + $0x120] ss:$8 sps:$4 sm:$0xff]   ;;  %v5310_v24 = vld [vmem:[%s7564_s4 + $0x134] ss:$8 sps:$4 sm:$0xff]   ;;  %v257_v47 = vrot.slane %v6547_v59, %v6639_v44 }
 0x10b   :  { %2012 = vmatpush1.bf16.msra.mxu0 %v5296_v50  ;;  %v5308_v25 = vld [vmem:[%s7564_s4 + $0x130] ss:$8 sps:$4 sm:$0xff]   ;;  %v5313_v26 = vld [vmem:[%s7564_s4 + $0x144] ss:$8 sps:$4 sm:$0xff]   ;;  %v5311_v27 = vld [vmem:[%s7564_s4 + $0x140] ss:$8 sps:$4 sm:$0xff]  }
 0x10c   :  { %2022 = vmatprep.subr.bf16.mxu0 %v5301_v51  ;;  %2285 = vmatpush1.bf16.msra.mxu1 %v5350_v55  ;;  %v5316_v28 = vld [vmem:[%s7564_s4 + $0x154] ss:$8 sps:$4 sm:$0xff]   ;;  %v5314_v29 = vld [vmem:[%s7564_s4 + $0x150] ss:$8 sps:$4 sm:$0xff]   ;;  %v5319_v30 = vld [vmem:[%s7564_s4 + $0x164] ss:$8 sps:$4 sm:$0xff]  }
 0x10d   :  { %v5317_v31 = vld [vmem:[%s7564_s4 + $0x160] ss:$8 sps:$4 sm:$0xff]   ;;  %v5322_v32 = vld [vmem:[%s7564_s4 + $0x174] ss:$8 sps:$4 sm:$0xff]   ;;  %v5320_v33 = vld [vmem:[%s7564_s4 + $0x170] ss:$8 sps:$4 sm:$0xff]  }
 0x10e   :  { %v5325_v34 = vld [vmem:[%s7564_s4 + $0x184] ss:$8 sps:$4 sm:$0xff]   ;;  %v5323_v35 = vld [vmem:[%s7564_s4 + $0x180] ss:$8 sps:$4 sm:$0xff]   ;;  %v5328_v36 = vld [vmem:[%s7564_s4 + $0x194] ss:$8 sps:$4 sm:$0xff]  }
 0x10f   :  { %v5326_v37 = vld [vmem:[%s7564_s4 + $0x190] ss:$8 sps:$4 sm:$0xff]   ;;  %v5331_v38 = vld [vmem:[%s7564_s4 + $0x1a4] ss:$8 sps:$4 sm:$0xff]   ;;  %v5329_v39 = vld [vmem:[%s7564_s4 + $0x1a0] ss:$8 sps:$4 sm:$0xff]  }
 0x110   :  { %v5334_v40 = vld [vmem:[%s7564_s4 + $0x1b4] ss:$8 sps:$4 sm:$0xff]   ;;  %v5332_v41 = vld [vmem:[%s7564_s4 + $0x1b0] ss:$8 sps:$4 sm:$0xff]   ;;  %v5337_v42 = vld [vmem:[%s7564_s4 + $0x1c4] ss:$8 sps:$4 sm:$0xff]  }
 0x111   :  { %v5335_v43 = vld [vmem:[%s7564_s4 + $0x1c0] ss:$8 sps:$4 sm:$0xff]   ;;  %v5340_v45 = vld [vmem:[%s7564_s4 + $0x1d4] ss:$8 sps:$4 sm:$0xff]   ;;  %v5338_v46 = vld [vmem:[%s7564_s4 + $0x1d0] ss:$8 sps:$4 sm:$0xff]  }
 0x112   :  { %v5343_v48 = vld [vmem:[%s7564_s4 + $0x1e4] ss:$8 sps:$4 sm:$0xff]   ;;  %v5341_v49 = vld [vmem:[%s7564_s4 + $0x1e0] ss:$8 sps:$4 sm:$0xff]   ;;  %v5346_v51 = vld [vmem:[%s7564_s4 + $0x1f4] ss:$8 sps:$4 sm:$0xff]  }
 0x113   :  { %v5344_v52 = vld [vmem:[%s7564_s4 + $0x1f0] ss:$8 sps:$4 sm:$0xff]   ;;  %v5355_v55 = vld [vmem:[%s7565_s5 + $0x44] ss:$16 sps:$4 sm:$0xff]  }
 0x114   :  { %v5353_v56 = vld [vmem:[%s7565_s5 + $0x40] ss:$16 sps:$4 sm:$0xff]   ;;  %2286 = vmatprep.subr.bf16.mxu1 %v5355_v55  ;;  %v5358_v59 = vld [vmem:[%s7565_s5 + $0x64] ss:$16 sps:$4 sm:$0xff]  }
 0x115   :  { %2287 = vmatpush1.bf16.msra.mxu1 %v5353_v56 }
 0x116   :  { %2288 = vmatprep.subr.bf16.mxu1 %v5358_v59 }
 0x1a1   :  { %v1407_v1 = vpop.f32.mrb[0].mxu0  ;;  %v6561_v2 = vpop.f32.mrb[0].mxu1 }
 0x1a2   :  { %v4898_v3 = vadd.f32 %v1407_v1, %v249_v62  ;;  %v1409_v4 = vpop.f32.mrb[1].mxu0  ;;  %v1573_v5 = vpop.f32.mrb[1].mxu1  ;;  %v4900_v50 = vadd.f32 %v6561_v2, %v257_v47  ;;  %v5356_v62 = vld [vmem:[%s7565_s5 + $0x60] ss:$16 sps:$4 sm:$0xff]   ;;  %v5364_v1 = vld [vmem:[%s7565_s5 + $0xa4] ss:$16 sps:$4 sm:$0xff]  }
 0x1a3   :  { %v4899_v6 = vadd.f32 %v1409_v4, %v253_v63  ;;  %v4901_v7 = vadd.f32 %v1573_v5, %v261_v0  ;;  %v1411_v8 = vpop.f32.mrb[2].mxu0  ;;  %v1575_v9 = vpop.f32.mrb[2].mxu1  ;;  %2289 = vmatpush1.bf16.msra.mxu1 %v5356_v62  ;;  %v5361_v63 = vld [vmem:[%s7565_s5 + $0x84] ss:$16 sps:$4 sm:$0xff]   ;;  %v5359_v0 = vld [vmem:[%s7565_s5 + $0x80] ss:$16 sps:$4 sm:$0xff]  }
 0x1a4   :  { %v1578_v10 = vmax.f32 %v4898_v3, 0.0  ;;  %v1412_v11 = vpop.f32.mrb[3].mxu0  ;;  %v1576_v12 = vpop.f32.mrb[3].mxu1  ;;  %v1580_v53 = vmax.f32 %v4900_v50, 0.0  ;;  %2290 = vmatprep.subr.bf16.mxu1 %v5361_v63  ;;  %v5362_v2 = vld [vmem:[%s7565_s5 + $0xa0] ss:$16 sps:$4 sm:$0xff]  }
 0x1a5   :  { %v1579_v13 = vmax.f32 %v4899_v6, 0.0  ;;  %v1581_v14 = vmax.f32 %v4901_v7, 0.0  ;;  %v5367_v3 = vld [vmem:[%s7565_s5 + $0xc4] ss:$16 sps:$4 sm:$0xff]   ;;  %v5365_v4 = vld [vmem:[%s7565_s5 + $0xc0] ss:$16 sps:$4 sm:$0xff]  }
 0x1a6   :  { %v1582_v18 = vpack.c.bf16 %v1578_v10, %v1578_v10  ;;  %v1584_v54 = vpack.c.bf16 %v1580_v53, %v1580_v53  ;;  %v5370_v5 = vld [vmem:[%s7565_s5 + $0xe4] ss:$16 sps:$4 sm:$0xff]   ;;  %v5368_v6 = vld [vmem:[%s7565_s5 + $0xe0] ss:$16 sps:$4 sm:$0xff]   ;;  %v5373_v7 = vld [vmem:[%s7565_s5 + $0xc] ss:$16 sps:$4 sm:$0xff]  }
 0x1a7   :  { %v1583_v15 = vpack.c.bf16 %v1579_v13, %v1579_v13  ;;  %v1585_v20 = vpack.c.bf16 %v1581_v14, %v1581_v14  ;;  %2291 = vmatpush1.bf16.msra.mxu1 %v5359_v0  ;;  %v5398_v8 = vld [vmem:[%s7566_s6 + $0x8] ss:$28 sps:$4 sm:$0xff]   ;;  %v5404_v11 = vld [vmem:[%s7566_s6 + $0x40] ss:$28 sps:$4 sm:$0xff]   ;;  %v5410_v13 = vld [vmem:[%s7566_s6 + $0x78] ss:$28 sps:$4 sm:$0xff]  }
 0x1a8   :  { %2292 = vmatprep.subr.bf16.mxu1 %v5364_v1  ;;  %v5400_v9 = vld [vmem:[%s7566_s6 + $0xc] ss:$28 sps:$4 sm:$0xff]   ;;  %v5406_v10 = vld [vmem:[%s7566_s6 + $0x44] ss:$28 sps:$4 sm:$0xff]   ;;  %v5412_v12 = vld [vmem:[%s7566_s6 + $0x7c] ss:$28 sps:$4 sm:$0xff]  }
 0x1a9   :  { %2013 = vmatprep.mubr.bf16.mxu0 %v1583_v15  ;;  %v5418_v14 = vld [vmem:[%s7566_s6 + $0xb4] ss:$28 sps:$4 sm:$0xff]   ;;  %v5371_v63 = vld [vmem:[%s7565_s5 + $0x8] ss:$16 sps:$4 sm:$0xff]   ;;  %v5376_v1 = vld [vmem:[%s7565_s5 + $0x2c] ss:$16 sps:$4 sm:$0xff]  }
 0x1aa   :  { %2014 = vmatmul.mubr.bf16.vlgmr.msra.gmra.mrb[4].mxu0 %v1582_v18  ;;  %v5416_v15 = vld [vmem:[%s7566_s6 + $0xb0] ss:$28 sps:$4 sm:$0xff]   ;;  %v5422_v18 = vld [vmem:[%s7566_s6 + $0xe8] ss:$28 sps:$4 sm:$0xff]  }
 0x1ab   :  { %2023 = vmatpush1.bf16.msra.mxu0 %v5299_v16  ;;  %2054 = vmatprep.mubr.bf16.mxu0 %v1585_v20  ;;  %v5424_v16 = vld [vmem:[%s7566_s6 + $0xec] ss:$28 sps:$4 sm:$0xff]   ;;  %v5428_v20 = vld [vmem:[%s7566_s6 + $0x120] ss:$28 sps:$4 sm:$0xff]  }
 0x1ac   :  { %2024 = vmatprep.subr.bf16.mxu0 %v5304_v19  ;;  %2293 = vmatpush1.bf16.msra.mxu1 %v5362_v2  ;;  %v5430_v19 = vld [vmem:[%s7566_s6 + $0x124] ss:$28 sps:$4 sm:$0xff]   ;;  %v5374_v2 = vld [vmem:[%s7565_s5 + $0x28] ss:$16 sps:$4 sm:$0xff]  }
 0x1ad   :  { %2294 = vmatprep.subr.bf16.mxu1 %v5367_v3  ;;  %v5379_v3 = vld [vmem:[%s7565_s5 + $0x4c] ss:$16 sps:$4 sm:$0xff]  }
 0x1af   :  { %2025 = vmatpush1.bf16.msra.mxu0 %v5302_v21  ;;  %v5436_v21 = vld [vmem:[%s7566_s6 + $0x15c] ss:$28 sps:$4 sm:$0xff]  }
 0x1b0   :  { %2026 = vmatprep.subr.bf16.mxu0 %v5307_v22  ;;  %2295 = vmatpush1.bf16.msra.mxu1 %v5365_v4  ;;  %v5434_v22 = vld [vmem:[%s7566_s6 + $0x158] ss:$28 sps:$4 sm:$0xff]  }
 0x1b1   :  { %2296 = vmatprep.subr.bf16.mxu1 %v5370_v5  ;;  %v5377_v4 = vld [vmem:[%s7565_s5 + $0x48] ss:$16 sps:$4 sm:$0xff]   ;;  %v5382_v5 = vld [vmem:[%s7565_s5 + $0x6c] ss:$16 sps:$4 sm:$0xff]  }
 0x1b3   :  { %2027 = vmatpush1.bf16.msra.mxu0 %v5305_v23  ;;  %v5442_v23 = vld [vmem:[%s7566_s6 + $0x194] ss:$28 sps:$4 sm:$0xff]  }
 0x1b4   :  { %2028 = vmatprep.subr.bf16.mxu0 %v5310_v24  ;;  %2297 = vmatpush1.bf16.msra.mxu1 %v5368_v6  ;;  %v5440_v24 = vld [vmem:[%s7566_s6 + $0x190] ss:$28 sps:$4 sm:$0xff]  }
 0x1b5   :  { %2323 = vmatprep.subr.bf16.mxu1 %v5373_v7  ;;  %v5385_v6 = vld [vmem:[%s7565_s5 + $0x8c] ss:$16 sps:$4 sm:$0xff]   ;;  %v5383_v7 = vld [vmem:[%s7565_s5 + $0x88] ss:$16 sps:$4 sm:$0xff]  }
 0x1b7   :  { %2029 = vmatpush1.bf16.msra.mxu0 %v5308_v25  ;;  %v5448_v25 = vld [vmem:[%s7566_s6 + $0x1cc] ss:$28 sps:$4 sm:$0xff]  }
 0x1b8   :  { %2030 = vmatprep.subr.bf16.mxu0 %v5313_v26  ;;  %v5446_v26 = vld [vmem:[%s7566_s6 + $0x1c8] ss:$28 sps:$4 sm:$0xff]  }
 0x1bb   :  { %2031 = vmatpush1.bf16.msra.mxu0 %v5311_v27  ;;  %v5454_v27 = vld [vmem:[%s7566_s6 + $0x204] ss:$28 sps:$4 sm:$0xff]  }
 0x1bc   :  { %2032 = vmatprep.subr.bf16.mxu0 %v5316_v28  ;;  %v5452_v28 = vld [vmem:[%s7566_s6 + $0x200] ss:$28 sps:$4 sm:$0xff]  }
 0x1bf   :  { %2033 = vmatpush1.bf16.msra.mxu0 %v5314_v29  ;;  %v5460_v29 = vld [vmem:[%s7566_s6 + $0x23c] ss:$28 sps:$4 sm:$0xff]  }
 0x1c0   :  { %2034 = vmatprep.subr.bf16.mxu0 %v5319_v30  ;;  %v5458_v30 = vld [vmem:[%s7566_s6 + $0x238] ss:$28 sps:$4 sm:$0xff]  }
 0x1c3   :  { %2035 = vmatpush1.bf16.msra.mxu0 %v5317_v31  ;;  %v5466_v31 = vld [vmem:[%s7566_s6 + $0x274] ss:$28 sps:$4 sm:$0xff]  }
 0x1c4   :  { %2036 = vmatprep.subr.bf16.mxu0 %v5322_v32  ;;  %v5464_v32 = vld [vmem:[%s7566_s6 + $0x270] ss:$28 sps:$4 sm:$0xff]  }
 0x1c7   :  { %2037 = vmatpush1.bf16.msra.mxu0 %v5320_v33  ;;  %v5472_v33 = vld [vmem:[%s7566_s6 + $0x2ac] ss:$28 sps:$4 sm:$0xff]  }
 0x1c8   :  { %2038 = vmatprep.subr.bf16.mxu0 %v5325_v34  ;;  %v5470_v34 = vld [vmem:[%s7566_s6 + $0x2a8] ss:$28 sps:$4 sm:$0xff]  }
 0x1cb   :  { %2039 = vmatpush1.bf16.msra.mxu0 %v5323_v35  ;;  %v5478_v35 = vld [vmem:[%s7566_s6 + $0x2e4] ss:$28 sps:$4 sm:$0xff]  }
 0x1cc   :  { %2040 = vmatprep.subr.bf16.mxu0 %v5328_v36  ;;  %v5476_v36 = vld [vmem:[%s7566_s6 + $0x2e0] ss:$28 sps:$4 sm:$0xff]  }
 0x1cf   :  { %2041 = vmatpush1.bf16.msra.mxu0 %v5326_v37  ;;  %v39_v37 = vld [vmem:[%s7567_s7 + $0x4] sm:$0x3] }
 0x1d0   :  { %2042 = vmatprep.subr.bf16.mxu0 %v5331_v38  ;;  %v1654_v38 = vrot.slane %v39_v37, %v6542_v58 }
 0x1d3   :  { %2043 = vmatpush1.bf16.msra.mxu0 %v5329_v39  ;;  %v1658_v39 = vrot.slane %v39_v37, %v6550_v60  ;;  %v5463_v37 = vld [vmem:[%s7566_s6 + $0x26c] ss:$28 sps:$4 sm:$0xff]  }
 0x1d4   :  { %2044 = vmatprep.subr.bf16.mxu0 %v5334_v40 }
 0x1d7   :  { %2045 = vmatpush1.bf16.msra.mxu0 %v5332_v41 }
 0x1d8   :  { %2046 = vmatprep.subr.bf16.mxu0 %v5337_v42 }
 0x1db   :  { %2047 = vmatpush1.bf16.msra.mxu0 %v5335_v43 }
 0x1dc   :  { %2048 = vmatprep.subr.bf16.mxu0 %v5340_v45 }
 0x1df   :  { %2049 = vmatpush1.bf16.msra.mxu0 %v5338_v46 }
 0x1e0   :  { %2050 = vmatprep.subr.bf16.mxu0 %v5343_v48 }
 0x1e3   :  { %2051 = vmatpush1.bf16.msra.mxu0 %v5341_v49 }
 0x1e4   :  { %2052 = vmatprep.subr.bf16.mxu0 %v5346_v51 }
 0x1e7   :  { %2053 = vmatpush1.bf16.msra.mxu0 %v5344_v52 }
 0x1e8   :  { %3898 = vmatprep.subr.bf16.mxu0 %v5400_v9  ;;  %v5386_v9 = vld [vmem:[%s7565_s5 + $0xa8] ss:$16 sps:$4 sm:$0xff]  }
 0x1ea   :  { %2055 = vmatmul.mubr.bf16.vlgmr.msra.gmra.mrb[4].mxu0 %v1584_v54  ;;  %v37_v54 = vld [vmem:[%s7562_s2] sm:$0xff] }
 0x1eb   :  { %3899 = vmatpush1.bf16.msra.mxu0 %v5398_v8  ;;  %v5388_v8 = vld [vmem:[%s7565_s5 + $0xac] ss:$16 sps:$4 sm:$0xff]  }
 0x1ec   :  { %3900 = vmatprep.subr.bf16.mxu0 %v5406_v10  ;;  %v5391_v10 = vld [vmem:[%s7565_s5 + $0xcc] ss:$16 sps:$4 sm:$0xff]  }
 0x1ef   :  { %3901 = vmatpush1.bf16.msra.mxu0 %v5404_v11  ;;  %v5389_v11 = vld [vmem:[%s7565_s5 + $0xc8] ss:$16 sps:$4 sm:$0xff]  }
 0x1f0   :  { %3902 = vmatprep.subr.bf16.mxu0 %v5412_v12  ;;  %v5394_v12 = vld [vmem:[%s7565_s5 + $0xec] ss:$16 sps:$4 sm:$0xff]  }
 0x1f3   :  { %3903 = vmatpush1.bf16.msra.mxu0 %v5410_v13  ;;  %v5392_v13 = vld [vmem:[%s7565_s5 + $0xe8] ss:$16 sps:$4 sm:$0xff]  }
 0x1f4   :  { %3904 = vmatprep.subr.bf16.mxu0 %v5418_v14  ;;  %v5397_v14 = vld [vmem:[%s7566_s6 + $0x4] ss:$28 sps:$4 sm:$0xff]  }
 0x1f7   :  { %3905 = vmatpush1.bf16.msra.mxu0 %v5416_v15  ;;  %v5395_v15 = vld [vmem:[%s7566_s6] ss:$28 sps:$4 sm:$0xff]  }
 0x1f8   :  { %3906 = vmatprep.subr.bf16.mxu0 %v5424_v16  ;;  %v5403_v16 = vld [vmem:[%s7566_s6 + $0x3c] ss:$28 sps:$4 sm:$0xff]  }
 0x1fb   :  { %3907 = vmatpush1.bf16.msra.mxu0 %v5422_v18  ;;  %v5401_v18 = vld [vmem:[%s7566_s6 + $0x38] ss:$28 sps:$4 sm:$0xff]  }
 0x1fc   :  { %3908 = vmatprep.subr.bf16.mxu0 %v5430_v19  ;;  %v5409_v19 = vld [vmem:[%s7566_s6 + $0x74] ss:$28 sps:$4 sm:$0xff]  }
 0x1ff   :  { %3909 = vmatpush1.bf16.msra.mxu0 %v5428_v20  ;;  %v5407_v20 = vld [vmem:[%s7566_s6 + $0x70] ss:$28 sps:$4 sm:$0xff]  }
 0x200   :  { %3910 = vmatprep.subr.bf16.mxu0 %v5436_v21  ;;  %v5415_v21 = vld [vmem:[%s7566_s6 + $0xac] ss:$28 sps:$4 sm:$0xff]  }
 0x203   :  { %3911 = vmatpush1.bf16.msra.mxu0 %v5434_v22  ;;  %v5413_v22 = vld [vmem:[%s7566_s6 + $0xa8] ss:$28 sps:$4 sm:$0xff]  }
 0x204   :  { %3912 = vmatprep.subr.bf16.mxu0 %v5442_v23  ;;  %v5421_v23 = vld [vmem:[%s7566_s6 + $0xe4] ss:$28 sps:$4 sm:$0xff]  }
 0x207   :  { %3913 = vmatpush1.bf16.msra.mxu0 %v5440_v24  ;;  %v5419_v24 = vld [vmem:[%s7566_s6 + $0xe0] ss:$28 sps:$4 sm:$0xff]  }
 0x208   :  { %3914 = vmatprep.subr.bf16.mxu0 %v5448_v25  ;;  %v5427_v25 = vld [vmem:[%s7566_s6 + $0x11c] ss:$28 sps:$4 sm:$0xff]  }
 0x20b   :  { %3915 = vmatpush1.bf16.msra.mxu0 %v5446_v26  ;;  %v5425_v26 = vld [vmem:[%s7566_s6 + $0x118] ss:$28 sps:$4 sm:$0xff]  }
 0x20c   :  { %3916 = vmatprep.subr.bf16.mxu0 %v5454_v27  ;;  %v5433_v27 = vld [vmem:[%s7566_s6 + $0x154] ss:$28 sps:$4 sm:$0xff]  }
 0x20f   :  { %3917 = vmatpush1.bf16.msra.mxu0 %v5452_v28  ;;  %v5431_v28 = vld [vmem:[%s7566_s6 + $0x150] ss:$28 sps:$4 sm:$0xff]  }
 0x210   :  { %3918 = vmatprep.subr.bf16.mxu0 %v5460_v29  ;;  %v5439_v29 = vld [vmem:[%s7566_s6 + $0x18c] ss:$28 sps:$4 sm:$0xff]  }
 0x213   :  { %3919 = vmatpush1.bf16.msra.mxu0 %v5458_v30  ;;  %v5437_v30 = vld [vmem:[%s7566_s6 + $0x188] ss:$28 sps:$4 sm:$0xff]  }
 0x214   :  { %3920 = vmatprep.subr.bf16.mxu0 %v5466_v31  ;;  %v5445_v31 = vld [vmem:[%s7566_s6 + $0x1c4] ss:$28 sps:$4 sm:$0xff]  }
 0x217   :  { %3921 = vmatpush1.bf16.msra.mxu0 %v5464_v32  ;;  %v5443_v32 = vld [vmem:[%s7566_s6 + $0x1c0] ss:$28 sps:$4 sm:$0xff]  }
 0x218   :  { %3922 = vmatprep.subr.bf16.mxu0 %v5472_v33  ;;  %v5451_v33 = vld [vmem:[%s7566_s6 + $0x1fc] ss:$28 sps:$4 sm:$0xff]  }
 0x21b   :  { %3923 = vmatpush1.bf16.msra.mxu0 %v5470_v34  ;;  %v5449_v34 = vld [vmem:[%s7566_s6 + $0x1f8] ss:$28 sps:$4 sm:$0xff]  }
 0x21c   :  { %3924 = vmatprep.subr.bf16.mxu0 %v5478_v35  ;;  %v5457_v35 = vld [vmem:[%s7566_s6 + $0x234] ss:$28 sps:$4 sm:$0xff]  }
 0x21f   :  { %3925 = vmatpush1.bf16.msra.mxu0 %v5476_v36  ;;  %v5455_v36 = vld [vmem:[%s7566_s6 + $0x230] ss:$28 sps:$4 sm:$0xff]  }
 0x2bd   :  { %v2056_v40 = vpop.f32.mrb[4].mxu0 }
 0x2be   :  { %v4902_v41 = vadd.f32 %v2056_v40, %v1654_v38  ;;  %v2058_v42 = vpop.f32.mrb[5].mxu0  ;;  %v5461_v38 = vld [vmem:[%s7566_s6 + $0x268] ss:$28 sps:$4 sm:$0xff]   ;;  %v5467_v40 = vld [vmem:[%s7566_s6 + $0x2a0] ss:$28 sps:$4 sm:$0xff]  }
 0x2bf   :  { %v4903_v43 = vadd.f32 %v2058_v42, %v1658_v39  ;;  %v2060_v45 = vpop.f32.mrb[6].mxu0  ;;  %v5469_v39 = vld [vmem:[%s7566_s6 + $0x2a4] ss:$28 sps:$4 sm:$0xff]   ;;  %v5473_v42 = vld [vmem:[%s7566_s6 + $0x2d8] ss:$28 sps:$4 sm:$0xff]  }
 0x2c0   :  { %v4303_v46 = vmul.f32 %v4902_v41, %v4902_v41  ;;  %v2061_v47 = vpop.f32.mrb[7].mxu0  ;;  %v5484_v45 = vld [vmem:[%s7566_s6 + $0x31c] ss:$28 sps:$4 sm:$0xff]  }
 0x2c1   :  { %v2063_v48 = vmul.f32 0.5, %v4903_v43  ;;  %v4302_v49 = vadd.f32 1.0, %v4903_v43  ;;  %v4305_v50 = vmul.f32 1.442695, %v4903_v43  ;;  %v5481_v43 = vld [vmem:[%s7566_s6 + $0x314] ss:$28 sps:$4 sm:$0xff]   ;;  %3926 = vmatprep.subr.bf16.mxu0 %v5484_v45 }
 0x2c2   :  { %v5479_v47 = vld [vmem:[%s7566_s6 + $0x310] ss:$28 sps:$4 sm:$0xff]   ;;  %v5541_v45 = vld [vmem:[%s7566_s6 + $0x544] ss:$28 sps:$4 sm:$0xff]  }
 0x2c3   :  { %v2064_v51 = vmul.f32 1.442695, %v2063_v48  ;;  %5715 = vpow2.f32 %v4305_v50  ;;  %v4304_v52 = vsub.f32 %v4302_v49, %v4303_v46  ;;  %v5482_v46 = vld [vmem:[%s7566_s6 + $0x318] ss:$28 sps:$4 sm:$0xff]   ;;  %v5487_v48 = vld [vmem:[%s7566_s6 + $0x34c] ss:$28 sps:$4 sm:$0xff]  }
 0x2c4   :  { %3927 = vmatpush1.bf16.msra.mxu0 %v5482_v46  ;;  %v5490_v49 = vld [vmem:[%s7566_s6 + $0x354] ss:$28 sps:$4 sm:$0xff]   ;;  %v5544_v46 = vld [vmem:[%s7566_s6 + $0x54c] ss:$28 sps:$4 sm:$0xff]  }
 0x2c5   :  { %5717 = vpow2.f32 %v2064_v51  ;;  %v5488_v50 = vld [vmem:[%s7566_s6 + $0x350] ss:$28 sps:$4 sm:$0xff]   ;;  %3928 = vmatprep.subr.bf16.mxu0 %v5490_v49  ;;  %v5485_v51 = vld [vmem:[%s7566_s6 + $0x348] ss:$28 sps:$4 sm:$0xff]   ;;  %v5539_v49 = vld [vmem:[%s7566_s6 + $0x540] ss:$28 sps:$4 sm:$0xff]  }
 0x2c8   :  { %3929 = vmatpush1.bf16.msra.mxu0 %v5488_v50  ;;  %v5542_v50 = vld [vmem:[%s7566_s6 + $0x548] ss:$28 sps:$4 sm:$0xff]  }
 0x2cd   :  { %v5716_v53 = vpop.eup %5715 }
 0x2ce   :  { %v6793_v55 = vsub.f32 %v4304_v52, %v5716_v53  ;;  %v5493_v52 = vld [vmem:[%s7566_s6 + $0x384] ss:$28 sps:$4 sm:$0xff]   ;;  %v5496_v53 = vld [vmem:[%s7566_s6 + $0x38c] ss:$28 sps:$4 sm:$0xff]  }
 0x2cf   :  { %v5718_v56 = vpop.eup %5717  ;;  %3939 = vmatprep.subr.bf16.mxu0 %v5496_v53  ;;  %v5545_v53 = vld [vmem:[%s7566_s6 + $0x578] ss:$28 sps:$4 sm:$0xff]  }
 0x2d0   :  { %v2066_v59 = vmul.f32 %v5718_v56, %v37_v54  ;;  %v6958_v54 = vld [vmem:[%s7567_s7 + $0x6] sm:$0xf] }
 0x2d1   :  { %v2105_v56 = vrot.slane %v6958_v54, %v6542_v58 }
 0x2d2   :  { %v2067_v62 = vadd.f32 %v4902_v41, %v2066_v59  ;;  %v5475_v41 = vld [vmem:[%s7566_s6 + $0x2dc] ss:$28 sps:$4 sm:$0xff]   ;;  %v2109_v59 = vrot.slane %v6958_v54, %v6550_v60 }
 0x2d4   :  { %v2068_v0 = vpack.c.bf16 %v2067_v62, %v2067_v62 }
 0x2d6   :  { %2315 = vmatmul.mubr.bf16.vlgmr.msra.gmra.mrb[4].mxu1 %v2068_v0 }
 0x2d7   :  { %2324 = vmatpush1.bf16.msra.mxu1 %v5371_v63  ;;  %2355 = vmatprep.mubr.bf16.mxu1 %v5766_v17  ;;  %v5380_v17 = vld [vmem:[%s7565_s5 + $0x68] ss:$16 sps:$4 sm:$0xff]  }
 0x2d8   :  { %2325 = vmatprep.subr.bf16.mxu1 %v5376_v1 }
 0x2db   :  { %2326 = vmatpush1.bf16.msra.mxu1 %v5374_v2 }
 0x2dc   :  { %2327 = vmatprep.subr.bf16.mxu1 %v5379_v3 }
 0x2df   :  { %2328 = vmatpush1.bf16.msra.mxu1 %v5377_v4 }
 0x2e0   :  { %2329 = vmatprep.subr.bf16.mxu1 %v5382_v5 }
 0x2e3   :  { %2330 = vmatpush1.bf16.msra.mxu1 %v5380_v17 }
 0x2e4   :  { %2331 = vmatprep.subr.bf16.mxu1 %v5385_v6  ;;  %v5491_v6 = vld [vmem:[%s7566_s6 + $0x380] ss:$28 sps:$4 sm:$0xff]  }
 0x2e7   :  { %2332 = vmatpush1.bf16.msra.mxu1 %v5383_v7  ;;  %v5494_v7 = vld [vmem:[%s7566_s6 + $0x388] ss:$28 sps:$4 sm:$0xff]  }
 0x2e8   :  { %2333 = vmatprep.subr.bf16.mxu1 %v5388_v8 }
 0x2eb   :  { %2334 = vmatpush1.bf16.msra.mxu1 %v5386_v9  ;;  %v5499_v9 = vld [vmem:[%s7566_s6 + $0x3bc] ss:$28 sps:$4 sm:$0xff]  }
 0x2ec   :  { %2335 = vmatprep.subr.bf16.mxu1 %v5391_v10  ;;  %v5502_v10 = vld [vmem:[%s7566_s6 + $0x3c4] ss:$28 sps:$4 sm:$0xff]  }
 0x2ef   :  { %2336 = vmatpush1.bf16.msra.mxu1 %v5389_v11  ;;  %v5497_v11 = vld [vmem:[%s7566_s6 + $0x3b8] ss:$28 sps:$4 sm:$0xff]  }
 0x2f0   :  { %2337 = vmatprep.subr.bf16.mxu1 %v5394_v12  ;;  %v5500_v12 = vld [vmem:[%s7566_s6 + $0x3c0] ss:$28 sps:$4 sm:$0xff]  }
 0x2f3   :  { %2338 = vmatpush1.bf16.msra.mxu1 %v5392_v13  ;;  %v5505_v13 = vld [vmem:[%s7566_s6 + $0x3f4] ss:$28 sps:$4 sm:$0xff]  }
 0x2f4   :  { %3816 = vmatprep.subr.bf16.mxu1 %v5397_v14  ;;  %v5508_v14 = vld [vmem:[%s7566_s6 + $0x3fc] ss:$28 sps:$4 sm:$0xff]  }
 0x2f6   :  { %2356 = vmatmul.mubr.bf16.vlgmr.msra.gmra.mrb[8].mxu1 %v2068_v0 }
 0x2f7   :  { %3817 = vmatpush1.bf16.msra.mxu1 %v5395_v15  ;;  %v5503_v15 = vld [vmem:[%s7566_s6 + $0x3f0] ss:$28 sps:$4 sm:$0xff]  }
 0x2f8   :  { %3818 = vmatprep.subr.bf16.mxu1 %v5403_v16  ;;  %v5506_v16 = vld [vmem:[%s7566_s6 + $0x3f8] ss:$28 sps:$4 sm:$0xff]  }
 0x2fb   :  { %3819 = vmatpush1.bf16.msra.mxu1 %v5401_v18  ;;  %v5511_v18 = vld [vmem:[%s7566_s6 + $0x42c] ss:$28 sps:$4 sm:$0xff]  }
 0x2fc   :  { %3820 = vmatprep.subr.bf16.mxu1 %v5409_v19  ;;  %v5514_v19 = vld [vmem:[%s7566_s6 + $0x434] ss:$28 sps:$4 sm:$0xff]  }
 0x2ff   :  { %3821 = vmatpush1.bf16.msra.mxu1 %v5407_v20  ;;  %v5509_v20 = vld [vmem:[%s7566_s6 + $0x428] ss:$28 sps:$4 sm:$0xff]  }
 0x300   :  { %3822 = vmatprep.subr.bf16.mxu1 %v5415_v21  ;;  %v5512_v21 = vld [vmem:[%s7566_s6 + $0x430] ss:$28 sps:$4 sm:$0xff]  }
 0x303   :  { %3823 = vmatpush1.bf16.msra.mxu1 %v5413_v22  ;;  %v5517_v22 = vld [vmem:[%s7566_s6 + $0x464] ss:$28 sps:$4 sm:$0xff]  }
 0x304   :  { %3824 = vmatprep.subr.bf16.mxu1 %v5421_v23  ;;  %v5520_v23 = vld [vmem:[%s7566_s6 + $0x46c] ss:$28 sps:$4 sm:$0xff]  }
 0x307   :  { %3825 = vmatpush1.bf16.msra.mxu1 %v5419_v24  ;;  %v5515_v24 = vld [vmem:[%s7566_s6 + $0x460] ss:$28 sps:$4 sm:$0xff]  }
 0x308   :  { %3826 = vmatprep.subr.bf16.mxu1 %v5427_v25  ;;  %v5518_v25 = vld [vmem:[%s7566_s6 + $0x468] ss:$28 sps:$4 sm:$0xff]  }
 0x30b   :  { %3827 = vmatpush1.bf16.msra.mxu1 %v5425_v26  ;;  %v5523_v26 = vld [vmem:[%s7566_s6 + $0x49c] ss:$28 sps:$4 sm:$0xff]  }
 0x30c   :  { %3828 = vmatprep.subr.bf16.mxu1 %v5433_v27  ;;  %v5526_v27 = vld [vmem:[%s7566_s6 + $0x4a4] ss:$28 sps:$4 sm:$0xff]  }
 0x30f   :  { %3829 = vmatpush1.bf16.msra.mxu1 %v5431_v28  ;;  %v5521_v28 = vld [vmem:[%s7566_s6 + $0x498] ss:$28 sps:$4 sm:$0xff]  }
 0x310   :  { %3830 = vmatprep.subr.bf16.mxu1 %v5439_v29  ;;  %v5524_v29 = vld [vmem:[%s7566_s6 + $0x4a0] ss:$28 sps:$4 sm:$0xff]  }
 0x313   :  { %3831 = vmatpush1.bf16.msra.mxu1 %v5437_v30  ;;  %v5529_v30 = vld [vmem:[%s7566_s6 + $0x4d4] ss:$28 sps:$4 sm:$0xff]  }
 0x314   :  { %3832 = vmatprep.subr.bf16.mxu1 %v5445_v31  ;;  %v5532_v31 = vld [vmem:[%s7566_s6 + $0x4dc] ss:$28 sps:$4 sm:$0xff]  }
 0x317   :  { %3833 = vmatpush1.bf16.msra.mxu1 %v5443_v32  ;;  %v2117_v32 = vrot.slane %v6958_v54, %v6553_v61 }
 0x318   :  { %3834 = vmatprep.subr.bf16.mxu1 %v5451_v33  ;;  %v5527_v33 = vld [vmem:[%s7566_s6 + $0x4d0] ss:$28 sps:$4 sm:$0xff]  }
 0x31b   :  { %3835 = vmatpush1.bf16.msra.mxu1 %v5449_v34  ;;  %v5530_v34 = vld [vmem:[%s7566_s6 + $0x4d8] ss:$28 sps:$4 sm:$0xff]  }
 0x31c   :  { %3836 = vmatprep.subr.bf16.mxu1 %v5457_v35  ;;  %v5535_v35 = vld [vmem:[%s7566_s6 + $0x50c] ss:$28 sps:$4 sm:$0xff]  }
 0x31f   :  { %3837 = vmatpush1.bf16.msra.mxu1 %v5455_v36  ;;  %v5538_v36 = vld [vmem:[%s7566_s6 + $0x514] ss:$28 sps:$4 sm:$0xff]  }
 0x320   :  { %3838 = vmatprep.subr.bf16.mxu1 %v5463_v37 }
 0x323   :  { %3839 = vmatpush1.bf16.msra.mxu1 %v5461_v38 }
 0x324   :  { %3840 = vmatprep.subr.bf16.mxu1 %v5469_v39 }
 0x327   :  { %3841 = vmatpush1.bf16.msra.mxu1 %v5467_v40 }
 0x328   :  { %3842 = vmatprep.subr.bf16.mxu1 %v5475_v41  ;;  %v5533_v41 = vld [vmem:[%s7566_s6 + $0x508] ss:$28 sps:$4 sm:$0xff]  }
 0x32b   :  { %3843 = vmatpush1.bf16.msra.mxu1 %v5473_v42  ;;  %v5536_v42 = vld [vmem:[%s7566_s6 + $0x510] ss:$28 sps:$4 sm:$0xff]  }
 0x32c   :  { %3844 = vmatprep.subr.bf16.mxu1 %v5481_v43 }
 0x32f   :  { %3845 = vmatpush1.bf16.msra.mxu1 %v5479_v47 }
 0x330   :  { %3846 = vmatprep.subr.bf16.mxu1 %v5487_v48 }
 0x333   :  { %3847 = vmatpush1.bf16.msra.mxu1 %v5485_v51  ;;  %v5547_v51 = vld [vmem:[%s7566_s6 + $0x57c] ss:$28 sps:$4 sm:$0xff]  }
 0x334   :  { %3857 = vmatprep.subr.bf16.mxu1 %v5493_v52  ;;  %v5550_v52 = vld [vmem:[%s7566_s6 + $0x584] ss:$28 sps:$4 sm:$0xff]  }
 0x3a9   :  { %v2316_v62 = vpop.f32.mrb[4].mxu1 }
 0x3aa   :  { %v2317_v63 = vadd.f32 %v2316_v62, %v2105_v56  ;;  %v2318_v0 = vpop.f32.mrb[5].mxu1  ;;  %v5548_v56 = vld [vmem:[%s7566_s6 + $0x580] ss:$28 sps:$4 sm:$0xff]  }
 0x3ab   :  { %v2319_v1 = vadd.f32 %v2318_v0, %v2109_v59  ;;  %v2320_v2 = vpop.f32.mrb[6].mxu1  ;;  %v5553_v59 = vld [vmem:[%s7566_s6 + $0x5b4] ss:$28 sps:$4 sm:$0xff]   ;;  %v5556_v62 = vld [vmem:[%s7566_s6 + $0x5bc] ss:$28 sps:$4 sm:$0xff]  }
 0x3ac   :  { %v2364_v3 = vmax.f32 %v2317_v63, 0.0  ;;  %v2321_v4 = vpop.f32.mrb[7].mxu1  ;;  %v5551_v63 = vld [vmem:[%s7566_s6 + $0x5b0] ss:$28 sps:$4 sm:$0xff]   ;;  %v5554_v0 = vld [vmem:[%s7566_s6 + $0x5b8] ss:$28 sps:$4 sm:$0xff]  }
 0x3ad   :  { %v2365_v5 = vmax.f32 %v2319_v1, 0.0  ;;  %v5559_v1 = vld [vmem:[%s7566_s6 + $0x5ec] ss:$28 sps:$4 sm:$0xff]   ;;  %v5562_v2 = vld [vmem:[%s7566_s6 + $0x5f4] ss:$28 sps:$4 sm:$0xff]  }
 0x3ae   :  { %v6972_v8 = vpack.c.bf16 %v2364_v3, %v2364_v3  ;;  %v5557_v3 = vld [vmem:[%s7566_s6 + $0x5e8] ss:$28 sps:$4 sm:$0xff]   ;;  %v5560_v4 = vld [vmem:[%s7566_s6 + $0x5f0] ss:$28 sps:$4 sm:$0xff]  }
 0x3af   :  { %v6964_v17 = vpack.c.bf16 %v2365_v5, %v2365_v5  ;;  %v5565_v5 = vld [vmem:[%s7566_s6 + $0x624] ss:$28 sps:$4 sm:$0xff]  }
 0x3b1   :  { %3848 = vmatprep.mubr.bf16.mxu1 %v6964_v17  ;;  %3930 = vmatprep.mubr.bf16.mxu0 %v6964_v17 }
 0x3b2   :  { %3849 = vmatmul.mubr.bf16.vlgmr.msra.gmra.mrb[12].mxu1 %v6972_v8  ;;  %3931 = vmatmul.mubr.bf16.vlgmr.msra.gmra.mrb[8].mxu0 %v6972_v8 }
 0x3b3   :  { %3858 = vmatpush1.bf16.msra.mxu1 %v5491_v6  ;;  %3940 = vmatpush1.bf16.msra.mxu0 %v5494_v7  ;;  %v5568_v6 = vld [vmem:[%s7566_s6 + $0x62c] ss:$28 sps:$4 sm:$0xff]   ;;  %v5563_v7 = vld [vmem:[%s7566_s6 + $0x620] ss:$28 sps:$4 sm:$0xff]  }
 0x3b4   :  { %3859 = vmatprep.subr.bf16.mxu1 %v5499_v9  ;;  %3941 = vmatprep.subr.bf16.mxu0 %v5502_v10  ;;  %v5566_v9 = vld [vmem:[%s7566_s6 + $0x628] ss:$28 sps:$4 sm:$0xff]   ;;  %v5571_v10 = vld [vmem:[%s7566_s6 + $0x65c] ss:$28 sps:$4 sm:$0xff]  }
 0x3b7   :  { %3860 = vmatpush1.bf16.msra.mxu1 %v5497_v11  ;;  %3942 = vmatpush1.bf16.msra.mxu0 %v5500_v12  ;;  %v5574_v11 = vld [vmem:[%s7566_s6 + $0x664] ss:$28 sps:$4 sm:$0xff]   ;;  %v5569_v12 = vld [vmem:[%s7566_s6 + $0x658] ss:$28 sps:$4 sm:$0xff]  }
 0x3b8   :  { %3861 = vmatprep.subr.bf16.mxu1 %v5505_v13  ;;  %3943 = vmatprep.subr.bf16.mxu0 %v5508_v14  ;;  %v5572_v13 = vld [vmem:[%s7566_s6 + $0x660] ss:$28 sps:$4 sm:$0xff]   ;;  %v2113_v14 = vrot.slane %v6958_v54, %v6639_v44  ;;  %v5578_v54 = vld [vmem:[%s7566_s6 + $0x698] ss:$28 sps:$4 sm:$0xff]  }
 0x3bb   :  { %3862 = vmatpush1.bf16.msra.mxu1 %v5503_v15  ;;  %3944 = vmatpush1.bf16.msra.mxu0 %v5506_v16  ;;  %v5577_v15 = vld [vmem:[%s7566_s6 + $0x694] ss:$28 sps:$4 sm:$0xff]   ;;  %v5580_v16 = vld [vmem:[%s7566_s6 + $0x69c] ss:$28 sps:$4 sm:$0xff]  }
 0x3bc   :  { %3863 = vmatprep.subr.bf16.mxu1 %v5511_v18  ;;  %3945 = vmatprep.subr.bf16.mxu0 %v5514_v19  ;;  %v5575_v18 = vld [vmem:[%s7566_s6 + $0x690] ss:$28 sps:$4 sm:$0xff]  }
 0x3bf   :  { %3864 = vmatpush1.bf16.msra.mxu1 %v5509_v20  ;;  %3946 = vmatpush1.bf16.msra.mxu0 %v5512_v21  ;;  %v5583_v20 = vld [vmem:[%s7566_s6 + $0x6cc] ss:$28 sps:$4 sm:$0xff]   ;;  %v5586_v21 = vld [vmem:[%s7566_s6 + $0x6d4] ss:$28 sps:$4 sm:$0xff]  }
 0x3c0   :  { %3865 = vmatprep.subr.bf16.mxu1 %v5517_v22  ;;  %3947 = vmatprep.subr.bf16.mxu0 %v5520_v23  ;;  %v5581_v22 = vld [vmem:[%s7566_s6 + $0x6c8] ss:$28 sps:$4 sm:$0xff]   ;;  %v5584_v23 = vld [vmem:[%s7566_s6 + $0x6d0] ss:$28 sps:$4 sm:$0xff]  }
 0x3c3   :  { %3866 = vmatpush1.bf16.msra.mxu1 %v5515_v24  ;;  %3948 = vmatpush1.bf16.msra.mxu0 %v5518_v25  ;;  %v5589_v25 = vld [vmem:[%s7566_s6 + $0x14] ss:$28 sps:$4 sm:$0xff]  }
 0x3c4   :  { %3867 = vmatprep.subr.bf16.mxu1 %v5523_v26  ;;  %3949 = vmatprep.subr.bf16.mxu0 %v5526_v27  ;;  %v5590_v26 = vld [vmem:[%s7566_s6 + $0x1d8] ss:$28 sps:$4 sm:$0xff]   ;;  %v5587_v27 = vld [vmem:[%s7566_s6 + $0x10] ss:$28 sps:$4 sm:$0xff]  }
 0x3c7   :  { %3868 = vmatpush1.bf16.msra.mxu1 %v5521_v28  ;;  %3950 = vmatpush1.bf16.msra.mxu0 %v5524_v29  ;;  %v5591_v29 = vld [vmem:[%s7566_s6 + $0x18] ss:$28 sps:$4 sm:$0xff]  }
 0x3c8   :  { %3869 = vmatprep.subr.bf16.mxu1 %v5529_v30  ;;  %3951 = vmatprep.subr.bf16.mxu0 %v5532_v31  ;;  %v5594_v30 = vld [vmem:[%s7566_s6 + $0x4c] ss:$28 sps:$4 sm:$0xff]  }
 0x3c9   :  { %v7058_v37 = vpop.f32.mrb[8].mxu1  ;;  %v5595_v31 = vld [vmem:[%s7566_s6 + $0x210] ss:$28 sps:$4 sm:$0xff]  }
 0x3ca   :  { %v2359_v38 = vpop.f32.mrb[9].mxu1  ;;  %v2358_v19 = vadd.f32 %v7058_v37, %v2113_v14  ;;  %v5604_v37 = vld [vmem:[%s7566_s6 + $0xbc] ss:$28 sps:$4 sm:$0xff]  }
 0x3cb   :  { %v2360_v39 = vadd.f32 %v2359_v38, %v2117_v32  ;;  %v2361_v40 = vpop.f32.mrb[10].mxu1  ;;  %3870 = vmatpush1.bf16.msra.mxu1 %v5527_v33  ;;  %3952 = vmatpush1.bf16.msra.mxu0 %v5530_v34  ;;  %v5592_v32 = vld [vmem:[%s7566_s6 + $0x48] ss:$28 sps:$4 sm:$0xff]   ;;  %v5596_v33 = vld [vmem:[%s7566_s6 + $0x50] ss:$28 sps:$4 sm:$0xff]  }
 0x3cc   :  { %v2362_v43 = vpop.f32.mrb[11].mxu1  ;;  %3871 = vmatprep.subr.bf16.mxu1 %v5535_v35  ;;  %3953 = vmatprep.subr.bf16.mxu0 %v5538_v36  ;;  %v2366_v24 = vmax.f32 %v2358_v19, 0.0  ;;  %v5599_v34 = vld [vmem:[%s7566_s6 + $0x84] ss:$28 sps:$4 sm:$0xff]   ;;  %v5644_v14 = vld [vmem:[%s7566_s6 + $0x27c] ss:$28 sps:$4 sm:$0xff]  }
 0x3cd   :  { %v2367_v47 = vmax.f32 %v2360_v39, 0.0  ;;  %v5600_v35 = vld [vmem:[%s7566_s6 + $0x248] ss:$28 sps:$4 sm:$0xff]   ;;  %v5597_v36 = vld [vmem:[%s7566_s6 + $0x80] ss:$28 sps:$4 sm:$0xff]  }
 0x3ce   :  { %v7178_v28 = vpack.c.bf16 %v2366_v24, %v2366_v24  ;;  %v5605_v38 = vld [vmem:[%s7566_s6 + $0x280] ss:$28 sps:$4 sm:$0xff]   ;;  %v5602_v39 = vld [vmem:[%s7566_s6 + $0xb8] ss:$28 sps:$4 sm:$0xff]   ;;  %v5607_v43 = vld [vmem:[%s7566_s6 + $0xf0] ss:$28 sps:$4 sm:$0xff]  }
 0x3cf   :  { %v7072_v48 = vpack.c.bf16 %v2367_v47, %v2367_v47  ;;  %3872 = vmatpush1.bf16.msra.mxu1 %v5533_v41  ;;  %3954 = vmatpush1.bf16.msra.mxu0 %v5536_v42  ;;  %v5606_v40 = vld [vmem:[%s7566_s6 + $0xc0] ss:$28 sps:$4 sm:$0xff]   ;;  %v5609_v41 = vld [vmem:[%s7566_s6 + $0xf4] ss:$28 sps:$4 sm:$0xff]   ;;  %v5652_v24 = vld [vmem:[%s7566_s6 + $0x2e8] ss:$28 sps:$4 sm:$0xff]  }
 0x3d0   :  { %3873 = vmatprep.subr.bf16.mxu1 %v5541_v45  ;;  %3955 = vmatprep.subr.bf16.mxu0 %v5544_v46  ;;  %v5610_v42 = vld [vmem:[%s7566_s6 + $0x2b8] ss:$28 sps:$4 sm:$0xff]   ;;  %v5614_v46 = vld [vmem:[%s7566_s6 + $0x12c] ss:$28 sps:$4 sm:$0xff]  }
 0x3d1   :  { %3889 = vmatprep.mubr.bf16.mxu1 %v7072_v48  ;;  %3971 = vmatprep.mubr.bf16.mxu0 %v7072_v48  ;;  %v5611_v45 = vld [vmem:[%s7566_s6 + $0xf8] ss:$28 sps:$4 sm:$0xff]   ;;  %v5615_v47 = vld [vmem:[%s7566_s6 + $0x2f0] ss:$28 sps:$4 sm:$0xff]  }
 0x3d2   :  { %v5650_v19 = vld [vmem:[%s7566_s6 + $0x638] ss:$28 sps:$4 sm:$0xff]  }
 0x3d3   :  { %3874 = vmatpush1.bf16.msra.mxu1 %v5539_v49  ;;  %3956 = vmatpush1.bf16.msra.mxu0 %v5542_v50  ;;  %v5612_v49 = vld [vmem:[%s7566_s6 + $0x128] ss:$28 sps:$4 sm:$0xff]   ;;  %v5616_v50 = vld [vmem:[%s7566_s6 + $0x130] ss:$28 sps:$4 sm:$0xff]  }
 0x3d4   :  { %3875 = vmatprep.subr.bf16.mxu1 %v5547_v51  ;;  %3957 = vmatprep.subr.bf16.mxu0 %v5550_v52  ;;  %v5619_v51 = vld [vmem:[%s7566_s6 + $0x164] ss:$28 sps:$4 sm:$0xff]  }
 0x3d5   :  { %v5620_v52 = vld [vmem:[%s7566_s6 + $0x328] ss:$28 sps:$4 sm:$0xff]  }
 0x3d7   :  { %3876 = vmatpush1.bf16.msra.mxu1 %v5545_v53  ;;  %3958 = vmatpush1.bf16.msra.mxu0 %v5548_v56  ;;  %v5617_v53 = vld [vmem:[%s7566_s6 + $0x160] ss:$28 sps:$4 sm:$0xff]   ;;  %v5621_v56 = vld [vmem:[%s7566_s6 + $0x168] ss:$28 sps:$4 sm:$0xff]  }
 0x3d8   :  { %3877 = vmatprep.subr.bf16.mxu1 %v5553_v59  ;;  %3959 = vmatprep.subr.bf16.mxu0 %v5556_v62  ;;  %v5624_v59 = vld [vmem:[%s7566_s6 + $0x19c] ss:$28 sps:$4 sm:$0xff]  }
 0x3d9   :  { %v5625_v62 = vld [vmem:[%s7566_s6 + $0x360] ss:$28 sps:$4 sm:$0xff]  }
 0x3db   :  { %3878 = vmatpush1.bf16.msra.mxu1 %v5551_v63  ;;  %3960 = vmatpush1.bf16.msra.mxu0 %v5554_v0  ;;  %v5622_v63 = vld [vmem:[%s7566_s6 + $0x198] ss:$28 sps:$4 sm:$0xff]   ;;  %v5626_v0 = vld [vmem:[%s7566_s6 + $0x1a0] ss:$28 sps:$4 sm:$0xff]  }
 0x3dc   :  { %3879 = vmatprep.subr.bf16.mxu1 %v5559_v1  ;;  %3961 = vmatprep.subr.bf16.mxu0 %v5562_v2  ;;  %v5629_v1 = vld [vmem:[%s7566_s6 + $0x1d4] ss:$28 sps:$4 sm:$0xff]  }
 0x3dd   :  { %v5630_v2 = vld [vmem:[%s7566_s6 + $0x558] ss:$28 sps:$4 sm:$0xff]  }
 0x3df   :  { %3880 = vmatpush1.bf16.msra.mxu1 %v5557_v3  ;;  %3962 = vmatpush1.bf16.msra.mxu0 %v5560_v4  ;;  %v5627_v3 = vld [vmem:[%s7566_s6 + $0x1d0] ss:$28 sps:$4 sm:$0xff]   ;;  %v5631_v4 = vld [vmem:[%s7566_s6 + $0x398] ss:$28 sps:$4 sm:$0xff]  }
 0x3e0   :  { %3881 = vmatprep.subr.bf16.mxu1 %v5565_v5  ;;  %3963 = vmatprep.subr.bf16.mxu0 %v5568_v6  ;;  %v5634_v5 = vld [vmem:[%s7566_s6 + $0x20c] ss:$28 sps:$4 sm:$0xff]  }
 0x3e1   :  { %v5635_v6 = vld [vmem:[%s7566_s6 + $0x590] ss:$28 sps:$4 sm:$0xff]  }
 0x3e3   :  { %3882 = vmatpush1.bf16.msra.mxu1 %v5563_v7  ;;  %3964 = vmatpush1.bf16.msra.mxu0 %v5566_v9  ;;  %v5632_v7 = vld [vmem:[%s7566_s6 + $0x208] ss:$28 sps:$4 sm:$0xff]   ;;  %v5636_v9 = vld [vmem:[%s7566_s6 + $0x3d0] ss:$28 sps:$4 sm:$0xff]  }
 0x3e4   :  { %3883 = vmatprep.subr.bf16.mxu1 %v5571_v10  ;;  %3965 = vmatprep.subr.bf16.mxu0 %v5574_v11  ;;  %v5639_v10 = vld [vmem:[%s7566_s6 + $0x244] ss:$28 sps:$4 sm:$0xff]  }
 0x3e5   :  { %v5640_v11 = vld [vmem:[%s7566_s6 + $0x5c8] ss:$28 sps:$4 sm:$0xff]  }
 0x3e7   :  { %3884 = vmatpush1.bf16.msra.mxu1 %v5569_v12  ;;  %3966 = vmatpush1.bf16.msra.mxu0 %v5572_v13  ;;  %v5637_v12 = vld [vmem:[%s7566_s6 + $0x240] ss:$28 sps:$4 sm:$0xff]   ;;  %v5641_v13 = vld [vmem:[%s7566_s6 + $0x408] ss:$28 sps:$4 sm:$0xff]  }
 0x3e8   :  { %3885 = vmatprep.subr.bf16.mxu1 %v5577_v15  ;;  %3967 = vmatprep.subr.bf16.mxu0 %v5580_v16  ;;  %v5645_v15 = vld [vmem:[%s7566_s6 + $0x600] ss:$28 sps:$4 sm:$0xff]   ;;  %v5642_v16 = vld [vmem:[%s7566_s6 + $0x278] ss:$28 sps:$4 sm:$0xff]  }
 0x3eb   :  { %3886 = vmatpush1.bf16.msra.mxu1 %v5575_v18  ;;  %3968 = vmatpush1.bf16.msra.mxu0 %v5578_v54  ;;  %v5646_v18 = vld [vmem:[%s7566_s6 + $0x440] ss:$28 sps:$4 sm:$0xff]   ;;  %v5649_v54 = vld [vmem:[%s7566_s6 + $0x2b4] ss:$28 sps:$4 sm:$0xff]  }
 0x3ec   :  { %3887 = vmatprep.subr.bf16.mxu1 %v5583_v20  ;;  %3969 = vmatprep.subr.bf16.mxu0 %v5586_v21  ;;  %v5647_v20 = vld [vmem:[%s7566_s6 + $0x2b0] ss:$28 sps:$4 sm:$0xff]   ;;  %v5651_v21 = vld [vmem:[%s7566_s6 + $0x478] ss:$28 sps:$4 sm:$0xff]  }
 0x3ef   :  { %3888 = vmatpush1.bf16.msra.mxu1 %v5581_v22  ;;  %3970 = vmatpush1.bf16.msra.mxu0 %v5584_v23  ;;  %v5654_v22 = vld [vmem:[%s7566_s6 + $0x2ec] ss:$28 sps:$4 sm:$0xff]  }
 0x3f0   :  { %3980 = vmatprep.subr.bf16.mxu1 %v5589_v25  ;;  %4854 = vmatprep.subr.bf16.mxu0 %v5590_v26  ;;  %v5655_v23 = vld [vmem:[%s7566_s6 + $0x670] ss:$28 sps:$4 sm:$0xff]   ;;  %v5659_v26 = vld [vmem:[%s7566_s6 + $0x324] ss:$28 sps:$4 sm:$0xff]  }
 0x3f1   :  { %v5656_v25 = vld [vmem:[%s7566_s6 + $0x4b0] ss:$28 sps:$4 sm:$0xff]  }
 0x3f2   :  { %3890 = vmatmul.mubr.bf16.vlgmr.msra.gmra.mrb[12].mxu1 %v7178_v28  ;;  %3972 = vmatmul.mubr.bf16.vlgmr.msra.gmra.mrb[8].mxu0 %v7178_v28 }
 0x3f3   :  { %3981 = vmatpush1.bf16.msra.mxu1 %v5587_v27  ;;  %4012 = vmatprep.mubr.bf16.mxu1 %v6964_v17  ;;  %v5660_v27 = vld [vmem:[%s7566_s6 + $0x6a8] ss:$28 sps:$4 sm:$0xff]  }
 0x3f4   :  { %4855 = vmatpush3.bf16.msra.mxu0 %v5591_v29  ;;  %4094 = vmatprep.mubr.bf16.mxu0 %v6964_v17  ;;  %v5601_v17 = vld [vmem:[%s7566_s6 + $0x88] ss:$28 sps:$4 sm:$0xff]   ;;  %v5657_v29 = vld [vmem:[%s7566_s6 + $0x320] ss:$28 sps:$4 sm:$0xff]  }
 0x3f5   :  { %3982 = vmatprep.subr.bf16.mxu1 %v5594_v30  ;;  %4856 = vmatprep.subr.bf16.mxu0 %v5595_v31  ;;  %v5661_v30 = vld [vmem:[%s7566_s6 + $0x4e8] ss:$28 sps:$4 sm:$0xff]   ;;  %v5664_v31 = vld [vmem:[%s7566_s6 + $0x35c] ss:$28 sps:$4 sm:$0xff]  }
 0x3f7   :  { %3983 = vmatpush1.bf16.msra.mxu1 %v5592_v32  ;;  %v5665_v32 = vld [vmem:[%s7566_s6 + $0x6e0] ss:$28 sps:$4 sm:$0xff]  }
 0x3f8   :  { %4857 = vmatpush3.bf16.msra.mxu0 %v5596_v33  ;;  %3984 = vmatprep.subr.bf16.mxu1 %v5599_v34  ;;  %v5662_v33 = vld [vmem:[%s7566_s6 + $0x358] ss:$28 sps:$4 sm:$0xff]   ;;  %v5666_v34 = vld [vmem:[%s7566_s6 + $0x520] ss:$28 sps:$4 sm:$0xff]  }
 0x3f9   :  { %4858 = vmatprep.subr.bf16.mxu0 %v5600_v35  ;;  %v5669_v35 = vld [vmem:[%s7566_s6 + $0x394] ss:$28 sps:$4 sm:$0xff]  }
 0x3fb   :  { %3985 = vmatpush1.bf16.msra.mxu1 %v5597_v36  ;;  %v5667_v36 = vld [vmem:[%s7566_s6 + $0x390] ss:$28 sps:$4 sm:$0xff]  }
 0x3fc   :  { %4859 = vmatpush3.bf16.msra.mxu0 %v5601_v17  ;;  %3986 = vmatprep.subr.bf16.mxu1 %v5604_v37  ;;  %v5672_v17 = vld [vmem:[%s7566_s6 + $0x3cc] ss:$28 sps:$4 sm:$0xff]  }
 0x3fd   :  { %4860 = vmatprep.subr.bf16.mxu0 %v5605_v38  ;;  %v5670_v37 = vld [vmem:[%s7566_s6 + $0x3c8] ss:$28 sps:$4 sm:$0xff]  }
 0x3fe   :  { %v5675_v38 = vld [vmem:[%s7566_s6 + $0x404] ss:$28 sps:$4 sm:$0xff]  }
 0x3ff   :  { %3987 = vmatpush1.bf16.msra.mxu1 %v5602_v39  ;;  %v5673_v39 = vld [vmem:[%s7566_s6 + $0x400] ss:$28 sps:$4 sm:$0xff]  }
 0x400   :  { %4861 = vmatpush3.bf16.msra.mxu0 %v5606_v40  ;;  %3988 = vmatprep.subr.bf16.mxu1 %v5609_v41  ;;  %v5681_v40 = vld [vmem:[%s7566_s6 + $0x474] ss:$28 sps:$4 sm:$0xff]  }
 0x401   :  { %4862 = vmatprep.subr.bf16.mxu0 %v5610_v42  ;;  %v5679_v41 = vld [vmem:[%s7566_s6 + $0x470] ss:$28 sps:$4 sm:$0xff]  }
 0x402   :  { %v5684_v42 = vld [vmem:[%s7566_s6 + $0x4ac] ss:$28 sps:$4 sm:$0xff]  }
 0x403   :  { %3989 = vmatpush1.bf16.msra.mxu1 %v5607_v43  ;;  %v5682_v43 = vld [vmem:[%s7566_s6 + $0x4a8] ss:$28 sps:$4 sm:$0xff]  }
 0x404   :  { %4863 = vmatpush3.bf16.msra.mxu0 %v5611_v45  ;;  %3990 = vmatprep.subr.bf16.mxu1 %v5614_v46  ;;  %v5687_v45 = vld [vmem:[%s7566_s6 + $0x4e4] ss:$28 sps:$4 sm:$0xff]  }
 0x405   :  { %4864 = vmatprep.subr.bf16.mxu0 %v5615_v47  ;;  %v5685_v46 = vld [vmem:[%s7566_s6 + $0x4e0] ss:$28 sps:$4 sm:$0xff]  }
 0x406   :  { %v5690_v47 = vld [vmem:[%s7566_s6 + $0x51c] ss:$28 sps:$4 sm:$0xff]  }
 0x407   :  { %3991 = vmatpush1.bf16.msra.mxu1 %v5612_v49  ;;  %v5688_v49 = vld [vmem:[%s7566_s6 + $0x518] ss:$28 sps:$4 sm:$0xff]  }
 0x408   :  { %4865 = vmatpush3.bf16.msra.mxu0 %v5616_v50  ;;  %3992 = vmatprep.subr.bf16.mxu1 %v5619_v51  ;;  %v5693_v50 = vld [vmem:[%s7566_s6 + $0x554] ss:$28 sps:$4 sm:$0xff]  }
 0x409   :  { %4866 = vmatprep.subr.bf16.mxu0 %v5620_v52  ;;  %v5691_v51 = vld [vmem:[%s7566_s6 + $0x550] ss:$28 sps:$4 sm:$0xff]  }
 0x40a   :  { %v5696_v52 = vld [vmem:[%s7566_s6 + $0x58c] ss:$28 sps:$4 sm:$0xff]  }
 0x40b   :  { %3993 = vmatpush1.bf16.msra.mxu1 %v5617_v53  ;;  %v5694_v53 = vld [vmem:[%s7566_s6 + $0x588] ss:$28 sps:$4 sm:$0xff]  }
 0x40c   :  { %4867 = vmatpush3.bf16.msra.mxu0 %v5621_v56  ;;  %3994 = vmatprep.subr.bf16.mxu1 %v5624_v59  ;;  %v5699_v56 = vld [vmem:[%s7566_s6 + $0x5c4] ss:$28 sps:$4 sm:$0xff]  }
 0x40d   :  { %4868 = vmatprep.subr.bf16.mxu0 %v5625_v62  ;;  %v5697_v59 = vld [vmem:[%s7566_s6 + $0x5c0] ss:$28 sps:$4 sm:$0xff]  }
 0x40e   :  { %v5702_v62 = vld [vmem:[%s7566_s6 + $0x5fc] ss:$28 sps:$4 sm:$0xff]  }
 0x40f   :  { %3995 = vmatpush1.bf16.msra.mxu1 %v5622_v63  ;;  %v5700_v63 = vld [vmem:[%s7566_s6 + $0x5f8] ss:$28 sps:$4 sm:$0xff]  }
 0x410   :  { %4869 = vmatpush3.bf16.msra.mxu0 %v5626_v0  ;;  %3996 = vmatprep.subr.bf16.mxu1 %v5629_v1  ;;  %v5705_v0 = vld [vmem:[%s7566_s6 + $0x634] ss:$28 sps:$4 sm:$0xff]  }
 0x411   :  { %4876 = vmatprep.subr.bf16.mxu0 %v5630_v2  ;;  %v5703_v1 = vld [vmem:[%s7566_s6 + $0x630] ss:$28 sps:$4 sm:$0xff]  }
 0x412   :  { %v5708_v2 = vld [vmem:[%s7566_s6 + $0x66c] ss:$28 sps:$4 sm:$0xff]  }
 0x413   :  { %4095 = vmatmul.mubr.bf16.vlgmr.msra.gmra.mrb[12].mxu0 %v6972_v8  ;;  %3997 = vmatpush1.bf16.msra.mxu1 %v5627_v3  ;;  %v5706_v3 = vld [vmem:[%s7566_s6 + $0x668] ss:$28 sps:$4 sm:$0xff]  }
 0x414   :  { %4877 = vmatpush3.bf16.msra.mxu0 %v5631_v4  ;;  %4134 = vmatprep.mubr.bf16.mxu0 %v7072_v48  ;;  %v5711_v4 = vld [vmem:[%s7566_s6 + $0x6a4] ss:$28 sps:$4 sm:$0xff]  }
 0x415   :  { %3998 = vmatprep.subr.bf16.mxu1 %v5634_v5  ;;  %4878 = vmatprep.subr.bf16.mxu0 %v5635_v6  ;;  %v5709_v5 = vld [vmem:[%s7566_s6 + $0x6a0] ss:$28 sps:$4 sm:$0xff]  }
 0x416   :  { %v5714_v6 = vld [vmem:[%s7566_s6 + $0x6dc] ss:$28 sps:$4 sm:$0xff]  }
 0x417   :  { %3999 = vmatpush1.bf16.msra.mxu1 %v5632_v7  ;;  %v5712_v7 = vld [vmem:[%s7566_s6 + $0x6d8] ss:$28 sps:$4 sm:$0xff]  }
 0x418   :  { %4879 = vmatpush3.bf16.msra.mxu0 %v5636_v9  ;;  %4000 = vmatprep.subr.bf16.mxu1 %v5639_v10  ;;  %v7472_v9 = vld [vmem:[%s7567_s7 + $0xa] sm:$0x7f] }
 0x419   :  { %4880 = vmatprep.subr.bf16.mxu0 %v5640_v11  ;;  %v2632_v10 = vrot.slane %v7472_v9, %v6542_v58  ;;  %v2640_v11 = vrot.slane %v7472_v9, %v6639_v44 }
 0x41b   :  { %4001 = vmatpush1.bf16.msra.mxu1 %v5637_v12  ;;  %v2636_v12 = vrot.slane %v7472_v9, %v6550_v60 }
 0x41c   :  { %4881 = vmatpush3.bf16.msra.mxu0 %v5641_v13  ;;  %4002 = vmatprep.subr.bf16.mxu1 %v5644_v14  ;;  %v2644_v13 = vrot.slane %v7472_v9, %v6553_v61 }
 0x41d   :  { %4882 = vmatprep.subr.bf16.mxu0 %v5645_v15 }
 0x41f   :  { %4003 = vmatpush1.bf16.msra.mxu1 %v5642_v16 }
 0x420   :  { %4883 = vmatpush3.bf16.msra.mxu0 %v5646_v18  ;;  %4004 = vmatprep.subr.bf16.mxu1 %v5649_v54 }
 0x421   :  { %4884 = vmatprep.subr.bf16.mxu0 %v5650_v19 }
 0x423   :  { %4005 = vmatpush1.bf16.msra.mxu1 %v5647_v20 }
 0x424   :  { %4885 = vmatpush3.bf16.msra.mxu0 %v5651_v21  ;;  %4006 = vmatprep.subr.bf16.mxu1 %v5654_v22 }
 0x425   :  { %4886 = vmatprep.subr.bf16.mxu0 %v5655_v23 }
 0x427   :  { %4007 = vmatpush1.bf16.msra.mxu1 %v5652_v24 }
 0x428   :  { %4887 = vmatpush3.bf16.msra.mxu0 %v5656_v25  ;;  %4008 = vmatprep.subr.bf16.mxu1 %v5659_v26 }
 0x429   :  { %4888 = vmatprep.subr.bf16.mxu0 %v5660_v27 }
 0x42b   :  { %4009 = vmatpush1.bf16.msra.mxu1 %v5657_v29 }
 0x42c   :  { %4889 = vmatpush3.bf16.msra.mxu0 %v5661_v30  ;;  %4010 = vmatprep.subr.bf16.mxu1 %v5664_v31 }
 0x42d   :  { %4890 = vmatprep.subr.bf16.mxu0 %v5665_v32 }
 0x42f   :  { %4011 = vmatpush1.bf16.msra.mxu1 %v5662_v33 }
 0x430   :  { %4891 = vmatpush3.bf16.msra.mxu0 %v5666_v34  ;;  %4021 = vmatprep.subr.bf16.mxu1 %v5669_v35 }
 0x432   :  { %4013 = vmatmul.mubr.bf16.vlgmr.msra.gmra.mrb[16].mxu1 %v6972_v8  ;;  %v5678_v8 = vld [vmem:[%s7566_s6 + $0x43c] ss:$28 sps:$4 sm:$0xff]  }
 0x433   :  { %4135 = vmatmul.mubr.bf16.vlgmr.msra.gmra.mrb[16].mxu0 %v7178_v28  ;;  %4022 = vmatpush1.bf16.msra.mxu1 %v5667_v36 }
 0x434   :  { %4053 = vmatprep.mubr.bf16.mxu1 %v7072_v48  ;;  %4023 = vmatprep.subr.bf16.mxu1 %v5672_v17  ;;  %v5676_v48 = vld [vmem:[%s7566_s6 + $0x438] ss:$28 sps:$4 sm:$0xff]  }
 0x437   :  { %4024 = vmatpush1.bf16.msra.mxu1 %v5670_v37 }
 0x438   :  { %4025 = vmatprep.subr.bf16.mxu1 %v5675_v38 }
 0x43b   :  { %4026 = vmatpush1.bf16.msra.mxu1 %v5673_v39 }
 0x43c   :  { %4027 = vmatprep.subr.bf16.mxu1 %v5678_v8 }
 0x43f   :  { %4028 = vmatpush1.bf16.msra.mxu1 %v5676_v48 }
 0x440   :  { %4029 = vmatprep.subr.bf16.mxu1 %v5681_v40 }
 0x443   :  { %4030 = vmatpush1.bf16.msra.mxu1 %v5679_v41 }
 0x444   :  { %4031 = vmatprep.subr.bf16.mxu1 %v5684_v42 }
 0x447   :  { %4032 = vmatpush1.bf16.msra.mxu1 %v5682_v43 }
 0x448   :  { %4033 = vmatprep.subr.bf16.mxu1 %v5687_v45 }
 0x44b   :  { %4034 = vmatpush1.bf16.msra.mxu1 %v5685_v46  ;;  %v5747_v46 = vld [vmem:[%s7561_s1 + $0x8] sm:$0xff] }
 0x44c   :  { %4035 = vmatprep.subr.bf16.mxu1 %v5690_v47  ;;  %v4258_v47 = vsub.f32 1.0, %v5747_v46 }
 0x44f   :  { %4036 = vmatpush1.bf16.msra.mxu1 %v5688_v49 }
 0x450   :  { %4037 = vmatprep.subr.bf16.mxu1 %v5693_v50 }
 0x453   :  { %4038 = vmatpush1.bf16.msra.mxu1 %v5691_v51 }
 0x454   :  { %4039 = vmatprep.subr.bf16.mxu1 %v5696_v52 }
 0x457   :  { %4040 = vmatpush1.bf16.msra.mxu1 %v5694_v53 }
 0x458   :  { %4041 = vmatprep.subr.bf16.mxu1 %v5699_v56 }
 0x45b   :  { %4042 = vmatpush1.bf16.msra.mxu1 %v5697_v59 }
 0x45c   :  { %4043 = vmatprep.subr.bf16.mxu1 %v5702_v62 }
 0x45f   :  { %4044 = vmatpush1.bf16.msra.mxu1 %v5700_v63 }
 0x460   :  { %4045 = vmatprep.subr.bf16.mxu1 %v5705_v0  ;;  %v5748_v0 = vld [vmem:[%s7561_s1] sm:$0xff] }
 0x463   :  { %4046 = vmatpush1.bf16.msra.mxu1 %v5703_v1  ;;  %v4257_v1 = vsub.f32 1.0, %v5748_v0 }
 0x464   :  { %4047 = vmatprep.subr.bf16.mxu1 %v5708_v2 }
 0x467   :  { %4048 = vmatpush1.bf16.msra.mxu1 %v5706_v3 }
 0x468   :  { %4049 = vmatprep.subr.bf16.mxu1 %v5711_v4 }
 0x46b   :  { %4050 = vmatpush1.bf16.msra.mxu1 %v5709_v5 }
 0x46c   :  { %4051 = vmatprep.subr.bf16.mxu1 %v5714_v6  ;;  %v5749_v6 = vld [vmem:[%s7561_s1 + $0x18] sm:$0xff] }
 0x46f   :  { %4052 = vmatpush1.bf16.msra.mxu1 %v5712_v7  ;;  %v4260_v7 = vsub.f32 1.0, %v5749_v6 }
 0x472   :  { %4054 = vmatmul.mubr.bf16.vlgmr.msra.gmra.mrb[16].mxu1 %v7178_v28 }
 0x4c5   :  { %v3891_v14 = vpop.f32.mrb[12].mxu1  ;;  %v3973_v15 = vpop.f32.mrb[8].mxu0 }
 0x4c6   :  { %v7482_v28 = vadd.f32 %v3891_v14, %v2632_v10  ;;  %v7484_v16 = vadd.f32 %v3973_v15, %v2640_v11  ;;  %v3893_v18 = vpop.f32.mrb[13].mxu1  ;;  %v3975_v54 = vpop.f32.mrb[9].mxu0 }
 0x4c7   :  { %v7486_v19 = vadd.f32 %v3893_v18, %v2636_v12  ;;  %v7488_v58 = vadd.f32 %v3975_v54, %v2644_v13  ;;  %v3895_v20 = vpop.f32.mrb[14].mxu1  ;;  %v3977_v44 = vpop.f32.mrb[10].mxu0  ;;  %v4148_v18 = vstv %s7560_s0 }
 0x4c8   :  { %v4159_v21 = vand.u32 2147483647, %v7482_v28  ;;  %v4161_v60 = vand.u32 2147483647, %v7484_v16  ;;  %v3896_v25 = vpop.f32.mrb[15].mxu1  ;;  %v3978_v26 = vpop.f32.mrb[11].mxu0  ;;  %vm4149_vm1 = vcmp.lt.s32.totalorder %v6539_v57, %v4148_v18 }
 0x4c9   :  { %v4160_v61 = vand.u32 2147483647, %v7486_v19  ;;  %v4162_v22 = vand.u32 2147483647, %v7488_v58  ;;  %v4152_v41 = vmax.f32 %v7482_v28, 0.0  ;;  %v4154_v49 = vmax.f32 %v7484_v16, 0.0 }
 0x4ca   :  { %v4166_v23 = vsub.f32 0.0, %v4159_v21  ;;  %v4168_v24 = vsub.f32 0.0, %v4161_v60  ;;  %v4153_v56 = vmax.f32 %v7486_v19, 0.0  ;;  %v4155_v3 = vmax.f32 %v7488_v58, 0.0  ;;  %v5750_v60 = vld [vmem:[%s7561_s1 + $0x10] sm:$0xff] }
 0x4cb   :  { %v4167_v27 = vsub.f32 0.0, %v4160_v61  ;;  %v4169_v29 = vsub.f32 0.0, %v4162_v22 }
 0x4cc   :  { %v4173_v30 = vmul.f32 1.442695, %v4166_v23  ;;  %v4177_v31 = vmul.f32 1.442695, %v4168_v24 }
 0x4cd   :  { %v4175_v32 = vmul.f32 1.442695, %v4167_v27  ;;  %v4179_v33 = vmul.f32 1.442695, %v4169_v29 }
 0x4ce   :  { %5719 = vpow2.f32 %v4173_v30 }
 0x4cf   :  { %5721 = vpow2.f32 %v4177_v31 }
 0x4d0   :  { %5723 = vpow2.f32 %v4175_v32 }
 0x4d1   :  { %5725 = vpow2.f32 %v4179_v33 }
 0x4d8   :  { %v5720_v34 = vpop.eup %5719 }
 0x4d9   :  { %v5722_v35 = vpop.eup %5721  ;;  %v4187_v36 = vadd.f32 1.0, %v5720_v34 }
 0x4da   :  { %v5724_v17 = vpop.eup %5723  ;;  %v4189_v37 = vadd.f32 1.0, %v5722_v35 }
 0x4db   :  { %v5726_v38 = vpop.eup %5725  ;;  %5727 = vlog2.f32 %v4187_v36  ;;  %v4188_v39 = vadd.f32 1.0, %v5724_v17 }
 0x4dc   :  { %5729 = vlog2.f32 %v4189_v37  ;;  %v4190_v8 = vadd.f32 1.0, %v5726_v38  ;;  %v5767_v38 = vmov 0.0  }
 0x4dd   :  { %5731 = vlog2.f32 %v4188_v39  ;;  %v7518_v39 = vsel %vm4149_vm1, 1.0, %v5767_v38 }
 0x4de   :  { %5733 = vlog2.f32 %v4190_v8 }
 0x4e5   :  { %v5728_v48 = vpop.eup %5727 }
 0x4e6   :  { %v5730_v40 = vpop.eup %5729  ;;  %v4195_v42 = vmul.f32 0.6931472, %v5728_v48  ;;  %v4870_v43 = vpop.f32.mrb[12].mxu0 }
 0x4e7   :  { %v5732_v45 = vpop.eup %5731  ;;  %v4199_v50 = vmul.f32 0.6931472, %v5730_v40  ;;  %v4871_v51 = vpop.f32.mrb[13].mxu0 }
 0x4e8   :  { %v5734_v52 = vpop.eup %5733  ;;  %v4208_v53 = vadd.f32 %v4195_v42, %v4152_v41  ;;  %v4197_v59 = vmul.f32 0.6931472, %v5732_v45  ;;  %v4872_v62 = vadd.f32 %v4871_v51, %v4870_v43  ;;  %v4873_v63 = vpop.f32.mrb[14].mxu0 }
 0x4e9   :  { %v4210_v2 = vadd.f32 %v4199_v50, %v4154_v49  ;;  %v4201_v4 = vmul.f32 0.6931472, %v5734_v52  ;;  %v4874_v5 = vpop.f32.mrb[15].mxu0 }
 0x4ea   :  { %v4215_v10 = vsub.f32 %v4208_v53, %v7482_v28  ;;  %v4236_v11 = vsub.f32 0.0, %v4208_v53  ;;  %v4209_v12 = vadd.f32 %v4197_v59, %v4153_v56  ;;  %v4259_v28 = vsub.f32 1.0, %v5750_v60 }
 0x4eb   :  { %v4217_v13 = vsub.f32 %v4210_v2, %v7484_v16  ;;  %v4238_v14 = vsub.f32 0.0, %v4210_v2  ;;  %v4211_v15 = vadd.f32 %v4201_v4, %v4155_v3 }
 0x4ec   :  { %v4222_v54 = vsub.f32 0.0, %v4215_v10  ;;  %v4243_v20 = vmax.f32 %v4236_v11, -100.0  ;;  %v4216_v44 = vsub.f32 %v4209_v12, %v7486_v19  ;;  %v4237_v21 = vsub.f32 0.0, %v4209_v12 }
 0x4ed   :  { %v4224_v61 = vsub.f32 0.0, %v4217_v13  ;;  %v4218_v22 = vsub.f32 %v4211_v15, %v7488_v58  ;;  %v4239_v16 = vsub.f32 0.0, %v4211_v15  ;;  %v4245_v24 = vmax.f32 %v4238_v14, -100.0 }
 0x4ee   :  { %v4229_v23 = vmax.f32 %v4222_v54, -100.0  ;;  %v4223_v25 = vsub.f32 0.0, %v4216_v44  ;;  %v4244_v26 = vmax.f32 %v4237_v21, -100.0  ;;  %v4264_v19 = vmul.f32 %v4257_v1, %v4243_v20 }
 0x4ef   :  { %v4231_v27 = vmax.f32 %v4224_v61, -100.0  ;;  %v4225_v29 = vsub.f32 0.0, %v4218_v22  ;;  %v4246_v32 = vmax.f32 %v4239_v16, -100.0  ;;  %v4266_v36 = vmul.f32 %v4259_v28, %v4245_v24 }
 0x4f0   :  { %v4250_v30 = vmul.f32 %v5748_v0, %v4229_v23  ;;  %v4230_v31 = vmax.f32 %v4223_v25, -100.0  ;;  %v4265_v37 = vmul.f32 %v4258_v47, %v4244_v26  ;;  %v2655_v47 = vsub.s32 6, %v6539_v57 }
 0x4f1   :  { %v4252_v33 = vmul.f32 %v5750_v60, %v4231_v27  ;;  %v4232_v34 = vmax.f32 %v4225_v29, -100.0  ;;  %v4267_v40 = vmul.f32 %v4260_v7, %v4246_v32  ;;  %v2651_v7 = vsub.s32 5, %v6539_v57 }
 0x4f2   :  { %v4271_v35 = vadd.f32 %v4264_v19, %v4250_v30  ;;  %v4251_v17 = vmul.f32 %v5747_v46, %v4230_v31  ;;  %v2656_v52 = vrot.slane %v7472_v9, %v2655_v47  ;;  %v5753_v47 = vld [vmem:[%s7561_s1 + $0x28] sm:$0xff] }
 0x4f3   :  { %v4253_v58 = vmul.f32 %v5749_v6, %v4232_v34  ;;  %v4273_v8 = vadd.f32 %v4266_v36, %v4252_v33  ;;  %v2647_v6 = vsub.s32 4, %v6539_v57  ;;  %v2652_v11 = vrot.slane %v7472_v9, %v2651_v7 }
 0x4f4   :  { %v4272_v48 = vadd.f32 %v4265_v37, %v4251_v17  ;;  %v4278_v41 = vmul.f32 %v7518_v39, %v4271_v35  ;;  %v4097_v59 = vadd.f32 %v4872_v62, %v2656_v52  ;;  %v4262_v52 = vsub.f32 1.0, %v5753_v47 }
 0x4f5   :  { %v4274_v42 = vadd.f32 %v4267_v40, %v4253_v58  ;;  %v4280_v45 = vmul.f32 %v7518_v39, %v4273_v8  ;;  %v2648_v10 = vrot.slane %v7472_v9, %v2647_v6 }
 0x4f6   :  { %v4279_v43 = vmul.f32 %v7518_v39, %v4272_v48 }
 0x4f7   :  { %v4281_v50 = vmul.f32 %v7518_v39, %v4274_v42  ;;  %v5751_v42 = vld [vmem:[%s7561_s1 + $0x30] sm:$0xff] }
 0x4f8   :  { %v4285_v49 = vadd.f32 %v4279_v43, %v4278_v41  ;;  %v4263_v43 = vsub.f32 1.0, %v5751_v42 }
 0x4fa   :  { %v4286_v51 = vadd.f32 %v4285_v49, %v4280_v45 }
 0x4fc   :  { %v7524_v46 = vadd.f32 %v4286_v51, %v4281_v50  ;;  %v5752_v50 = vld [vmem:[%s7561_s1 + $0x20] sm:$0xff] }
 0x4fd   :  { %v4261_v51 = vsub.f32 1.0, %v5752_v50 }
 0x506   :  { %v4892_v53 = vpop.f32.mrb[16].mxu0 }
 0x507   :  { %v4893_v56 = vpop.f32.mrb[17].mxu0 }
 0x508   :  { %v4894_v63 = vadd.f32 %v4893_v56, %v4892_v53  ;;  %v4895_v0 = vpop.f32.mrb[18].mxu0 }
 0x509   :  { %v4896_v1 = vpop.f32.mrb[19].mxu0 }
 0x50a   :  { %v4137_v2 = vadd.f32 %v4894_v63, %v4097_v59 }
 0x50c   :  { %v4165_v3 = vand.u32 2147483647, %v4137_v2  ;;  %v4158_v26 = vmax.f32 %v4137_v2, 0.0 }
 0x50e   :  { %v4172_v4 = vsub.f32 0.0, %v4165_v3 }
 0x510   :  { %v4185_v5 = vmul.f32 1.442695, %v4172_v4 }
 0x512   :  { %5735 = vpow2.f32 %v4185_v5 }
 0x51c   :  { %v5736_v12 = vpop.eup %5735 }
 0x51d   :  { %v4193_v54 = vadd.f32 1.0, %v5736_v12 }
 0x51f   :  { %5737 = vlog2.f32 %v4193_v54  ;;  %v4308_v54 = vmul.f32 %v7518_v39, %v6793_v55 }
 0x529   :  { %v5738_v57 = vpop.eup %5737 }
 0x52a   :  { %v4207_v23 = vmul.f32 0.6931472, %v5738_v57 }
 0x52c   :  { %v4214_v27 = vadd.f32 %v4207_v23, %v4158_v26 }
 0x52e   :  { %v4221_v29 = vsub.f32 %v4214_v27, %v4137_v2  ;;  %v4242_v36 = vsub.f32 0.0, %v4214_v27 }
 0x530   :  { %v4228_v19 = vsub.f32 0.0, %v4221_v29  ;;  %v4249_v41 = vmax.f32 %v4242_v36, -100.0 }
 0x532   :  { %v4235_v37 = vmax.f32 %v4228_v19, -100.0  ;;  %v4270_v1 = vmul.f32 %v4263_v43, %v4249_v41 }
 0x534   :  { %v4256_v59 = vmul.f32 %v5751_v42, %v4235_v37 }
 0x536   :  { %v4277_v6 = vadd.f32 %v4270_v1, %v4256_v59 }
 0x545   :  { %v4055_v13 = vpop.f32.mrb[16].mxu1 }
 0x546   :  { %v4908_v14 = vadd.f32 %v4055_v13, %v2648_v10  ;;  %v4057_v62 = vpop.f32.mrb[17].mxu1  ;;  %v4284_v13 = vmul.f32 %v7518_v39, %v4277_v6 }
 0x547   :  { %v4909_v15 = vadd.f32 %v4057_v62, %v2652_v11  ;;  %v4059_v18 = vpop.f32.mrb[18].mxu1 }
 0x548   :  { %v4163_v20 = vand.u32 2147483647, %v4908_v14  ;;  %v4060_v44 = vpop.f32.mrb[19].mxu1  ;;  %v4156_v32 = vmax.f32 %v4908_v14, 0.0 }
 0x549   :  { %v4164_v21 = vand.u32 2147483647, %v4909_v15  ;;  %v4157_v34 = vmax.f32 %v4909_v15, 0.0 }
 0x54a   :  { %v4170_v60 = vsub.f32 0.0, %v4163_v20 }
 0x54b   :  { %v4171_v28 = vsub.f32 0.0, %v4164_v21 }
 0x54c   :  { %v4181_v61 = vmul.f32 1.442695, %v4170_v60 }
 0x54d   :  { %v4183_v22 = vmul.f32 1.442695, %v4171_v28 }
 0x54e   :  { %5739 = vpow2.f32 %v4181_v61 }
 0x54f   :  { %5741 = vpow2.f32 %v4183_v22 }
 0x558   :  { %v5740_v16 = vpop.eup %5739 }
 0x559   :  { %v5742_v9 = vpop.eup %5741  ;;  %v4191_v24 = vadd.f32 1.0, %v5740_v16 }
 0x55a   :  { %v4192_v25 = vadd.f32 1.0, %v5742_v9 }
 0x55b   :  { %5743 = vlog2.f32 %v4191_v24 }
 0x55c   :  { %5745 = vlog2.f32 %v4192_v25 }
 0x565   :  { %v5744_v30 = vpop.eup %5743 }
 0x566   :  { %v5746_v31 = vpop.eup %5745  ;;  %v4203_v33 = vmul.f32 0.6931472, %v5744_v30 }
 0x567   :  { %v4205_v35 = vmul.f32 0.6931472, %v5746_v31 }
 0x568   :  { %v4212_v17 = vadd.f32 %v4203_v33, %v4156_v32 }
 0x569   :  { %v4213_v58 = vadd.f32 %v4205_v35, %v4157_v34 }
 0x56a   :  { %v4219_v38 = vsub.f32 %v4212_v17, %v4908_v14  ;;  %v4240_v8 = vsub.f32 0.0, %v4212_v17 }
 0x56b   :  { %v4220_v48 = vsub.f32 %v4213_v58, %v4909_v15  ;;  %v4241_v40 = vsub.f32 0.0, %v4213_v58  ;;  %v4290_v15 = vsel %vm1246_vm0, %v4284_v13, 0.0 }
 0x56c   :  { %v4226_v45 = vsub.f32 0.0, %v4219_v38  ;;  %v4247_v49 = vmax.f32 %v4240_v8, -100.0 }
 0x56d   :  { %v4227_v53 = vsub.f32 0.0, %v4220_v48  ;;  %v4248_v56 = vmax.f32 %v4241_v40, -100.0 }
 0x56e   :  { %v4233_v63 = vmax.f32 %v4226_v45, -100.0  ;;  %v4268_v3 = vmul.f32 %v4261_v51, %v4247_v49 }
 0x56f   :  { %v4234_v0 = vmax.f32 %v4227_v53, -100.0  ;;  %v4269_v5 = vmul.f32 %v4262_v52, %v4248_v56 }
 0x570   :  { %v4254_v2 = vmul.f32 %v5752_v50, %v4233_v63 }
 0x571   :  { %v4255_v4 = vmul.f32 %v5753_v47, %v4234_v0 }
 0x572   :  { %v4275_v7 = vadd.f32 %v4268_v3, %v4254_v2 }
 0x573   :  { %v4276_v10 = vadd.f32 %v4269_v5, %v4255_v4 }
 0x574   :  { %v4282_v11 = vmul.f32 %v7518_v39, %v4275_v7 }
 0x575   :  { %v4283_v12 = vmul.f32 %v7518_v39, %v4276_v10 }
 0x576   :  { %v4288_v14 = vadd.f32 %v7524_v46, %v4282_v11 }
 0x578   :  { %v4289_v62 = vadd.f32 %v4288_v14, %v4283_v12 }
 0x57a   :  { %v4291_v18 = vadd.f32 %v4290_v15, %v4289_v62 }
 0x57c   :  { %4292 = vadd.xlane.f32.xlu0 %v4291_v18 }
 0x580   :  { %4309 = vadd.xlane.f32.xlu0 %v4308_v54 }
 0x609   :  { %v4293_v20 = vpop.xlane.xlu0 %4292 }
 0x60a   :  { %v4294_v44 = vrot.slane %v4293_v20, 4 }
 0x60c   :  { %v4295_v21 = vadd.f32 %v4294_v44, %v4293_v20 }
 0x60d   :  { %v4310_v60 = vpop.xlane.xlu0 %4309 }
 0x60e   :  { %v4296_v28 = vrot.slane %v4295_v21, 2  ;;  %v4311_v61 = vrot.slane %v4310_v60, 4 }
 0x610   :  { %v4312_v22 = vadd.f32 %v4311_v61, %v4310_v60  ;;  %v4297_v57 = vadd.f32 %v4296_v28, %v4295_v21 }
 0x612   :  { %v4313_v16 = vrot.slane %v4312_v22, 2  ;;  %v4298_v9 = vrot.slane %v4297_v57, 1 }
 0x614   :  { %v4314_v46 = vadd.f32 %v4313_v16, %v4312_v22  ;;  %v4299_v23 = vadd.f32 %v4298_v9, %v4297_v57 }
 0x616   :  { %4950 = vpush %v4299_v23  ;;  %v4315_v24 = vrot.slane %v4314_v46, 1 }
 0x618   :  { %v4316_v25 = vadd.f32 %v4315_v24, %v4314_v46 }
 0x61a   :  { %4952 = vpush %v4316_v25 }
 0x647   :  { %s4951_s1 = spop %4950 }
 0x648   :  { %s4301_s26 = ssub.f32 0.0, %s4951_s1 }
 0x64b   :  { %s4953_s25 = spop %4952 }
 0x64c   :  { %s4318_s27 = smul.f32 -0.5, %s4953_s25 }
 0x64e   :  { %s4319_s28 = sadd.f32 %s4318_s27, %s4301_s26 }
 0x650   :  { %4321 = sst [smem:[#allocation4]] %s4319_s28 }
 0x651   :  { %5763 = shalt.err (!%p5760_p2)
}
 0x652   :  { %s5768_s13 = smov [#allocation4]  }
 0x653   :  { %4329 = dma.smem_to_hbm %s5768_s13, 16, %s7568_s8, [#allocation5]  }
 0x654   :  { %5764 = dma.done.wait [#allocation5], 16  }
 0x655   :  { %5765 = vsyncadd [#allocation5], 4294967280 }
 0x656   :  { %4333 = sfence }
 0x657   :  { %4334 = vsyncpa [#allocation5], 1 }

</bundles_post_ra>
